<compile_context>
chip_gen: v7x
topology: tpu7x:2x2x1
jax: 0.10.0
libtpu: 0.0.40
codegen_flags: <defaults>
</compile_context>

<pallas_src>
import functools

import jax
import jax.numpy as jnp
from jax.experimental import pallas as pl
from jax.experimental.pallas import tpu as pltpu

EPS = 1e-5
LANE = 128          # channel (lane) padding
ROW_ALIGN = 16      # row-stride alignment (bf16 sublane packing)
TM_MAX = 512        # M tile (rows) upper bound, per perf review 256-512


def _round_up(x, m):
    return (x + m - 1) // m * m


def _pick_tm(mo):
    return mo if mo <= TM_MAX else TM_MAX


@functools.lru_cache(maxsize=None)
def _vmem_limit_bytes():
    """v7x: 64 MiB/TC -> keep headroom; v5e/v6e: 128 MiB -> allow big slabs."""
    try:
        cap = int(pltpu.get_tpu_info().vmem_capacity_bytes)
        if cap <= 64 * 1024 * 1024:
            return 44 * 1024 * 1024
        return 96 * 1024 * 1024
    except Exception:
        return 48 * 1024 * 1024


# ---------------------------------------------------------------------------
# Pass 1: K-folded conv taps (bf16 MXU operands, f32 VMEM accumulator) + BN
# statistics (per-tile partial sums, masked to valid rows/columns).
# ---------------------------------------------------------------------------
def _conv_stats_kernel(x_ref, w_ref, mask_ref, z_ref, sum_ref, ssq_ref,
                       acc_ref, *, tap_offsets, tm):
    m = pl.program_id(1)
    base = m * tm
    for t, off in enumerate(tap_offsets):          # static unroll (<= 3 taps)
        start = pl.multiple_of(base + off, ROW_ALIGN)
        xs = x_ref[0, pl.ds(start, tm), :]         # (tm, K) bf16, aligned
        d = jnp.dot(xs, w_ref[t], preferred_element_type=jnp.float32)
        if t == 0:
            acc_ref[...] = d
        else:
            acc_ref[...] += d                      # accumulate in VMEM scratch
    acc = acc_ref[...]
    z_ref[0] = acc.astype(z_ref.dtype)             # bf16 writeback
    zm = acc * mask_ref[...]                       # (tm,1) resident mask
    sum_ref[0, 0] = jnp.sum(zm, axis=0, keepdims=True)
    ssq_ref[0, 0] = jnp.sum(zm * acc, axis=0, keepdims=True)


def _conv_pass1(xin, weff, tap_offsets, mask, tm, num_mt, coutp):
    """xin: (N, rows_f, K) bf16 folded slab; weff: (T, K, Coutp).
    Returns z (N, num_mt*tm, Coutp) bf16 and per-(image, tile) BN sums."""
    n, rows_f, k = xin.shape
    ntap = weff.shape[0]
    padded_m = num_mt * tm
    kernel = functools.partial(
        _conv_stats_kernel,
        tap_offsets=tuple(int(o) for o in tap_offsets), tm=tm)
    z, sums, ssq = pl.pallas_call(
        kernel,
        out_shape=(jax.ShapeDtypeStruct((n, padded_m, coutp), jnp.bfloat16),
                   jax.ShapeDtypeStruct((n, num_mt, 1, coutp), jnp.float32),
                   jax.ShapeDtypeStruct((n, num_mt, 1, coutp), jnp.float32)),
        grid=(n, num_mt),
        in_specs=[
            # Whole per-image slab stays VMEM-resident across its m tiles
            # (block index only changes with the image axis -> one DMA/image).
            pl.BlockSpec((1, rows_f, k), lambda i, m: (i, 0, 0)),
            pl.BlockSpec((ntap, k, coutp), lambda i, m: (0, 0, 0)),
            pl.BlockSpec((tm, 1), lambda i, m: (m, 0)),
        ],
        out_specs=(
            pl.BlockSpec((1, tm, coutp), lambda i, m: (i, m, 0)),
            pl.BlockSpec((1, 1, 1, coutp), lambda i, m: (i, m, 0, 0)),
            pl.BlockSpec((1, 1, 1, coutp), lambda i, m: (i, m, 0, 0)),
        ),
        scratch_shapes=[pltpu.VMEM((tm, coutp), jnp.float32)],
        compiler_params=pltpu.CompilerParams(
            dimension_semantics=("parallel", "parallel"),
            vmem_limit_bytes=_vmem_limit_bytes()),
    )(xin.astype(jnp.bfloat16), weff.astype(jnp.bfloat16), mask)
    return z, sums, ssq


# ---------------------------------------------------------------------------
# Pass 2: BN affine [+ residual branch with its own folded BN] [+ ReLU]
# ---------------------------------------------------------------------------
def _bn_act_kernel(*refs, apply_relu, has_residual):
    if has_residual:
        z_ref, sc_ref, sh_ref, r_ref, rsc_ref, rsh_ref, o_ref = refs
    else:
        z_ref, sc_ref, sh_ref, o_ref = refs
    y = z_ref[0].astype(jnp.float32) * sc_ref[...] + sh_ref[...]
    if has_residual:
        y = y + (r_ref[0].astype(jnp.float32) * rsc_ref[...] + rsh_ref[...])
    if apply_relu:
        y = jnp.maximum(y, 0.0)
    o_ref[0] = y.astype(o_ref.dtype)


def _bn_act_pass2(z, scale, shift, tm, num_mt, residual=None, *,
                  apply_relu, out_dtype):
    n, padded_m, coutp = z.shape
    slab_spec = pl.BlockSpec((1, tm, coutp), lambda i, m: (i, m, 0))
    vec_spec = pl.BlockSpec((1, coutp), lambda i, m: (0, 0))
    args = [z, scale.reshape(1, coutp), shift.reshape(1, coutp)]
    in_specs = [slab_spec, vec_spec, vec_spec]
    has_res = residual is not None
    if has_res:
        r, rsc, rsh = residual
        args += [r, rsc.reshape(1, coutp), rsh.reshape(1, coutp)]
        in_specs += [slab_spec, vec_spec, vec_spec]
    kernel = functools.partial(_bn_act_kernel, apply_relu=apply_relu,
                               has_residual=has_res)
    return pl.pallas_call(
        kernel,
        out_shape=jax.ShapeDtypeStruct((n, padded_m, coutp), out_dtype),
        grid=(n, num_mt),
        in_specs=in_specs,
        out_specs=slab_spec,
        compiler_params=pltpu.CompilerParams(
            dimension_semantics=("parallel", "parallel"),
            vmem_limit_bytes=_vmem_limit_bytes()),
    )(*args)


def _bn_scale_shift(sums, ssq, count, gamma, beta, coutp):
    """Fold global batch statistics into per-channel scale/shift (f32)."""
    total = jnp.sum(sums, axis=(0, 1, 2))
    total_sq = jnp.sum(ssq, axis=(0, 1, 2))
    mean = total / count
    var = jnp.maximum(total_sq / count - mean * mean, 0.0)
    inv = jax.lax.rsqrt(var + EPS)
    g = jnp.zeros((coutp,), jnp.float32).at[:gamma.shape[0]].set(
        gamma.astype(jnp.float32))
    b = jnp.zeros((coutp,), jnp.float32).at[:beta.shape[0]].set(
        beta.astype(jnp.float32))
    scale = g * inv
    shift = b - mean * scale
    return scale, shift


def _make_mask(padded_m, wd, ho, wo):
    rows = jnp.arange(padded_m)
    valid = (rows < ho * wd) & ((rows % wd) < wo)
    return valid.astype(jnp.float32).reshape(padded_m, 1)


# ---------------------------------------------------------------------------
# Layout builders (JAX glue, bf16): folded per-image slabs + tap offsets.
# ---------------------------------------------------------------------------
def _build_3x3_s1(x_nhwc, w_oihw, coutp):
    """3x3 / stride-1 / pad-1: kj folded into lanes -> 3 taps of K=3*Cin."""
    n, h, w, cin = x_nhwc.shape
    cout = w_oihw.shape[0]
    ho, wo = h, w
    wd = _round_up(w + 2, ROW_ALIGN)
    mo = ho * wd
    tm = _pick_tm(mo)
    num_mt = pl.cdiv(mo, tm)
    padded_m = num_mt * tm
    rows_f = padded_m + 2 * wd                 # max tap offset = 2*wd
    rows_u = rows_f + 2                        # kj shifts 0..2
    hu = max(-(-rows_u // wd), h + 2)
    u = jnp.zeros((n, hu, wd, cin), x_nhwc.dtype)
    u = u.at[:, 1:h + 1, 1:w + 1, :].set(x_nhwc)
    uf = u.reshape(n, hu * wd, cin)
    xin = jnp.concatenate([uf[:, kj:kj + rows_f, :] for kj in range(3)],
                          axis=-1)             # (n, rows_f, 3*cin)
    wk = jnp.transpose(w_oihw, (2, 3, 1, 0)).astype(jnp.float32)  # (3,3,ci,co)
    weff = jnp.zeros((3, 3 * cin, coutp), jnp.float32)
    for ki in range(3):
        for kj in range(3):
            weff = weff.at[ki, kj * cin:(kj + 1) * cin, :cout].set(wk[ki, kj])
    offs = [ki * wd for ki in range(3)]
    return xin, weff, offs, ho, wo, wd, tm, num_mt, padded_m


def _build_3x3_s2(x_nhwc, w_oihw, coutp):
    """3x3 / stride-2 / pad-1 via space-to-depth + dj fold -> 2 taps, K=8*Cin."""
    n, h, w, cin = x_nhwc.shape
    cout = w_oihw.shape[0]
    ho, wo = (h - 1) // 2 + 1, (w - 1) // 2 + 1
    wd = _round_up(wo + 1, ROW_ALIGN)
    mo = ho * wd
    tm = _pick_tm(mo)
    num_mt = pl.cdiv(mo, tm)
    padded_m = num_mt * tm
    rows_f = padded_m + wd                     # max tap offset = wd
    rows_s = rows_f + 1                        # dj shift 0..1
    hs = max(-(-rows_s // wd), ho + 1)
    xpad = jnp.zeros((n, 2 * hs, 2 * wd, cin), x_nhwc.dtype)
    xpad = xpad.at[:, 1:h + 1, 1:w + 1, :].set(x_nhwc)
    xs2d = xpad.reshape(n, hs, 2, wd, 2, cin)
    xs2d = xs2d.transpose(0, 1, 3, 2, 4, 5).reshape(n, hs * wd, 4 * cin)
    xin = jnp.concatenate([xs2d[:, dj:dj + rows_f, :] for dj in range(2)],
                          axis=-1)             # (n, rows_f, 8*cin)
    wk = jnp.transpose(w_oihw, (2, 3, 1, 0)).astype(jnp.float32)
    weff = jnp.zeros((2, 8 * cin, coutp), jnp.float32)
    for di in range(2):
        for dj in range(2):
            for a in range(2):
                for b in range(2):
                    ki, kj = 2 * di + a, 2 * dj + b
                    if ki > 2 or kj > 2:
                        continue
                    lo = dj * 4 * cin + (2 * a + b) * cin
                    weff = weff.at[di, lo:lo + cin, :cout].set(wk[ki, kj])
    offs = [0, wd]
    return xin, weff, offs, ho, wo, wd, tm, num_mt, padded_m


def _build_1x1(x_nhwc, w_oihw, stride, coutp, wd, padded_m, ho, wo):
    """1x1 / stride-s / pad-0: single tap on the consumer's compute domain."""
    n, _, _, cin = x_nhwc.shape
    cout = w_oihw.shape[0]
    xs = x_nhwc[:, ::stride, ::stride, :]
    assert xs.shape[1] == ho and xs.shape[2] == wo
    hx = max(-(-padded_m // wd), ho)
    u = jnp.zeros((n, hx, wd, cin), x_nhwc.dtype)
    u = u.at[:, :ho, :wo, :].set(xs)
    xin = u.reshape(n, hx * wd, cin)[:, :padded_m, :]
    wk = jnp.transpose(w_oihw, (2, 3, 1, 0)).reshape(1, cin, cout)
    weff = jnp.zeros((1, cin, coutp), jnp.float32).at[:, :, :cout].set(
        wk.astype(jnp.float32))
    return xin, weff, [0]


# ---------------------------------------------------------------------------
# BasicBlock forward (NCHW in / NCHW out, like the PyTorch module)
# ---------------------------------------------------------------------------
def basic_block_forward(y_nchw, params, stride):
    assert stride in (1, 2)
    y = jnp.transpose(y_nchw, (0, 2, 3, 1)).astype(jnp.bfloat16)   # NCHW->NHWC
    n, h, w, cin = y.shape
    c1 = params["conv1_w"].shape[0]
    c2 = params["conv2_w"].shape[0]
    c1p, c2p = _round_up(c1, LANE), _round_up(c2, LANE)

    # conv1 -> bn1 -> relu
    build1 = _build_3x3_s1 if stride == 1 else _build_3x3_s2
    xin1, w1, offs1, ho1, wo1, wd1, tm1, nmt1, pm1 = build1(
        y, params["conv1_w"], c1p)
    mask1 = _make_mask(pm1, wd1, ho1, wo1)
    z1, s1, q1 = _conv_pass1(xin1, w1, offs1, mask1, tm1, nmt1, c1p)
    sc1, sh1 = _bn_scale_shift(s1, q1, n * ho1 * wo1,
                               params["bn1_g"], params["bn1_b"], c1p)
    x1 = _bn_act_pass2(z1, sc1, sh1, tm1, nmt1,
                       apply_relu=True, out_dtype=jnp.bfloat16)
    # TODO(synk): remaining XLA relayout glue (see header).
    x1 = x1[:, :ho1 * wd1, :].reshape(n, ho1, wd1, c1p)[:, :, :wo1, :c1]

    # conv2 (bn2 normalisation fused into the final pass below)
    xin2, w2, offs2, ho2, wo2, wd2, tm2, nmt2, pm2 = _build_3x3_s1(
        x1, params["conv2_w"], c2p)
    mask2 = _make_mask(pm2, wd2, ho2, wo2)
    z2, s2, q2 = _conv_pass1(xin2, w2, offs2, mask2, tm2, nmt2, c2p)
    sc2, sh2 = _bn_scale_shift(s2, q2, n * ho2 * wo2,
                               params["bn2_g"], params["bn2_b"], c2p)

    # shortcut branch
    if stride != 1 or cin != c2:
        xins, ws_, offss = _build_1x1(y, params["sc_w"], stride, c2p,
                                      wd2, pm2, ho2, wo2)
        zs, ss, qs = _conv_pass1(xins, ws_, offss, mask2, tm2, nmt2, c2p)
        scs, shs = _bn_scale_shift(ss, qs, n * ho2 * wo2,
                                   params["sc_bn_g"], params["sc_bn_b"], c2p)
        residual = (zs, scs, shs)
    else:
        r_img = jnp.zeros((n, ho2, wd2, c2p), jnp.bfloat16)
        r_img = r_img.at[:, :, :wo2, :cin].set(y)
        r = jnp.zeros((n, pm2, c2p), jnp.bfloat16)
        r = r.at[:, :ho2 * wd2, :].set(r_img.reshape(n, ho2 * wd2, c2p))
        residual = (r, jnp.ones((c2p,), jnp.float32),
                    jnp.zeros((c2p,), jnp.float32))

    # bn2 + shortcut-BN + residual add + relu, fused in one kernel
    out = _bn_act_pass2(z2, sc2, sh2, tm2, nmt2, residual=residual,
                        apply_relu=True, out_dtype=jnp.float32)
    out = out[:, :ho2 * wd2, :].reshape(n, ho2, wd2, c2p)[:, :, :wo2, :c2]
    return jnp.transpose(out, (0, 3, 1, 2))                       # NHWC->NCHW


# ---------------------------------------------------------------------------
# Pure-JAX reference (PyTorch training-mode semantics with bf16 MXU operands)
# ---------------------------------------------------------------------------
def _ref_bn_train(x_nchw, g, b):
    mean = jnp.mean(x_nchw, axis=(0, 2, 3), keepdims=True)
    var = jnp.mean(jnp.square(x_nchw - mean), axis=(0, 2, 3), keepdims=True)
    return ((x_nchw - mean) * jax.lax.rsqrt(var + EPS)
            * g.reshape(1, -1, 1, 1) + b.reshape(1, -1, 1, 1))


def _ref_conv(x_nchw, w_oihw, stride, pad):
    return jax.lax.conv_general_dilated(
        x_nchw.astype(jnp.bfloat16), w_oihw.astype(jnp.bfloat16),
        (stride, stride), [(pad, pad), (pad, pad)],
        dimension_numbers=("NCHW", "OIHW", "NCHW"),
        preferred_element_type=jnp.float32)


def basic_block_reference(y, params, stride):
    in_planes = y.shape[1]
    out_planes = params["conv2_w"].shape[0]
    x = jax.nn.relu(_ref_bn_train(_ref_conv(y, params["conv1_w"], stride, 1),
                                  params["bn1_g"], params["bn1_b"]))
    x = _ref_bn_train(_ref_conv(x, params["conv2_w"], 1, 1),
                      params["bn2_g"], params["bn2_b"])
    if stride != 1 or in_planes != out_planes:
        sc = _ref_bn_train(_ref_conv(y, params["sc_w"], stride, 0),
                           params["sc_bn_g"], params["sc_bn_b"])
    else:
        sc = y
    return jax.nn.relu(x + sc)


# ---------------------------------------------------------------------------
def init_params(key, in_planes, intermediate_planes, out_planes, stride):
    ks = jax.random.split(key, 9)
    p = {
        "conv1_w": 0.1 * jax.random.normal(
            ks[0], (intermediate_planes, in_planes, 3, 3), jnp.float32),
        "bn1_g": 1.0 + 0.1 * jax.random.normal(
            ks[1], (intermediate_planes,), jnp.float32),
        "bn1_b": 0.1 * jax.random.normal(
            ks[2], (intermediate_planes,), jnp.float32),
        "conv2_w": 0.1 * jax.random.normal(
            ks[3], (out_planes, intermediate_planes, 3, 3), jnp.float32),
        "bn2_g": 1.0 + 0.1 * jax.random.normal(
            ks[4], (out_planes,), jnp.float32),
        "bn2_b": 0.1 * jax.random.normal(ks[5], (out_planes,), jnp.float32),
    }
    if stride != 1 or in_planes != out_planes:
        p["sc_w"] = 0.1 * jax.random.normal(
            ks[6], (out_planes, in_planes, 1, 1), jnp.float32)
        p["sc_bn_g"] = 1.0 + 0.1 * jax.random.normal(
            ks[7], (out_planes,), jnp.float32)
        p["sc_bn_b"] = 0.1 * jax.random.normal(
            ks[8], (out_planes,), jnp.float32)
    return p


if __name__ == "__main__":
    # Small BasicBlock: in_planes=4 -> intermediate=8 -> out=8, stride=2
    # (exercises the stride-2 conv1 and the 1x1-conv + BN shortcut path).
    in_planes, intermediate_planes, out_planes, stride = 4, 8, 8, 2

    key = jax.random.PRNGKey(0)
    kx, kp = jax.random.split(key)
    x = jax.random.normal(kx, (2, in_planes, 16, 16), jnp.float32)  # NCHW
    params = init_params(kp, in_planes, intermediate_planes, out_planes, stride)

    fwd = jax.jit(functools.partial(basic_block_forward, stride=stride))
    out = jax.block_until_ready(fwd(x, params))

    ref = jax.block_until_ready(basic_block_reference(x, params, stride))
    assert out.shape == ref.shape == (2, out_planes, 8, 8)
    # Tolerance: bf16 MXU operands are modeled in the reference; the remaining
    # gap is the bf16 storage of the three pre-BN activation slabs (per perf
    # review), each contributing ~2^-8 relative error amplified by the BN
    # scale gamma/sigma (~2x here), i.e. a worst-case of a few 1e-2.
    max_err = float(jnp.max(jnp.abs(out - ref)))
    assert jnp.allclose(out, ref, rtol=2e-2, atol=5e-2), (
        f"mismatch vs reference, max abs err = {max_err}")
    print("KERNEL_OK")
</pallas_src>

<mosaic_0001>
module attributes {stable_mosaic.version = 11 : i64} {
  func.func @_bn_act_kernel(%arg0: i32, %arg1: i32, %arg2: memref<1x128x128xbf16, #tpu.memory_space<vmem>>, %arg3: memref<1x128xf32, #tpu.memory_space<vmem>>, %arg4: memref<1x128xf32, #tpu.memory_space<vmem>>, %arg5: memref<1x128x128xbf16, #tpu.memory_space<vmem>>) attributes {dimension_semantics = [#tpu.dimension_semantics<parallel>, #tpu.dimension_semantics<parallel>], iteration_bounds = array<i64: 2, 1>, scalar_prefetch = 0 : i64, scratch_operands = 0 : i64, tpu.core_type = #tpu.core_type<tc>, window_params = [{transform_indices = @transform_0, window_bounds = array<i64: 1, 128, 128>}, {pipeline_mode = #tpu.pipeline_mode<synchronous>, transform_indices = @transform_1, window_bounds = array<i64: 1, 128>}, {pipeline_mode = #tpu.pipeline_mode<synchronous>, transform_indices = @transform_2, window_bounds = array<i64: 1, 128>}, {transform_indices = @transform_3, window_bounds = array<i64: 1, 128, 128>}]} {
    %c0 = arith.constant 0 : index
    %c0_0 = arith.constant 0 : index
    %c0_1 = arith.constant 0 : index
    %0 = vector.load %arg2[%c0, %c0_0, %c0_1] : memref<1x128x128xbf16, #tpu.memory_space<vmem>>, vector<1x128x128xbf16>
    %1 = vector.shape_cast %0 : vector<1x128x128xbf16> to vector<128x128xbf16>
    %2 = arith.extf %1 : vector<128x128xbf16> to vector<128x128xf32>
    %c0_2 = arith.constant 0 : index
    %c0_3 = arith.constant 0 : index
    %3 = vector.load %arg3[%c0_2, %c0_3] : memref<1x128xf32, #tpu.memory_space<vmem>>, vector<1x128xf32>
    %4 = vector.broadcast %3 : vector<1x128xf32> to vector<128x128xf32>
    %5 = arith.mulf %2, %4 : vector<128x128xf32>
    %c0_4 = arith.constant 0 : index
    %c0_5 = arith.constant 0 : index
    %6 = vector.load %arg4[%c0_4, %c0_5] : memref<1x128xf32, #tpu.memory_space<vmem>>, vector<1x128xf32>
    %7 = vector.broadcast %6 : vector<1x128xf32> to vector<128x128xf32>
    %8 = arith.addf %5, %7 : vector<128x128xf32>
    %cst = arith.constant 0.000000e+00 : f32
    %9 = vector.broadcast %cst : f32 to vector<128x128xf32>
    %10 = arith.maximumf %8, %9 : vector<128x128xf32>
    %11 = arith.truncf %10 : vector<128x128xf32> to vector<128x128xbf16>
    %c0_6 = arith.constant 0 : index
    %c0_7 = arith.constant 0 : index
    %c0_8 = arith.constant 0 : index
    %12 = vector.load %arg5[%c0_6, %c0_7, %c0_8] : memref<1x128x128xbf16, #tpu.memory_space<vmem>>, vector<1x128x128xbf16>
    %13 = vector.shape_cast %12 : vector<1x128x128xbf16> to vector<128x128xbf16>
    %14 = vector.shape_cast %11 : vector<128x128xbf16> to vector<1x128x128xbf16>
    tpu.vector_store %arg5[%c0_6, %c0_7, %c0_8], %14 {strides = array<i32>} : memref<1x128x128xbf16, #tpu.memory_space<vmem>>, vector<1x128x128xbf16>,
    return
  }
  func.func @transform_0(%arg0: i32, %arg1: i32) -> (i32, i32, i32) {
    %c0_i32 = arith.constant 0 : i32
    %c0_i32_0 = arith.constant 0 : i32
    return %arg0, %arg1, %c0_i32 : i32, i32, i32
  }
  func.func @transform_1(%arg0: i32, %arg1: i32) -> (i32, i32) {
    %c0_i32 = arith.constant 0 : i32
    %c0_i32_0 = arith.constant 0 : i32
    %c0_i32_1 = arith.constant 0 : i32
    return %c0_i32, %c0_i32_0 : i32, i32
  }
  func.func @transform_2(%arg0: i32, %arg1: i32) -> (i32, i32) {
    %c0_i32 = arith.constant 0 : i32
    %c0_i32_0 = arith.constant 0 : i32
    %c0_i32_1 = arith.constant 0 : i32
    return %c0_i32, %c0_i32_0 : i32, i32
  }
  func.func @transform_3(%arg0: i32, %arg1: i32) -> (i32, i32, i32) {
    %c0_i32 = arith.constant 0 : i32
    %c0_i32_0 = arith.constant 0 : i32
    return %arg0, %arg1, %c0_i32 : i32, i32, i32
  }
}

module attributes {stable_mosaic.version = 11 : i64} {
  func.func @_conv_stats_kernel(%arg0: i32, %arg1: i32, %arg2: memref<1x144x32xbf16, #tpu.memory_space<vmem>>, %arg3: memref<2x32x128xbf16, #tpu.memory_space<vmem>>, %arg4: memref<128x1xf32, #tpu.memory_space<vmem>>, %arg5: memref<1x128x128xbf16, #tpu.memory_space<vmem>>, %arg6: memref<1x1x1x128xf32, #tpu.memory_space<vmem>>, %arg7: memref<1x1x1x128xf32, #tpu.memory_space<vmem>>, %arg8: memref<128x128xf32, #tpu.memory_space<vmem>>) attributes {dimension_semantics = [#tpu.dimension_semantics<parallel>, #tpu.dimension_semantics<parallel>], iteration_bounds = array<i64: 2, 1>, scalar_prefetch = 0 : i64, scratch_operands = 1 : i64, tpu.core_type = #tpu.core_type<tc>, window_params = [{transform_indices = @transform_0, window_bounds = array<i64: 1, 144, 32>}, {pipeline_mode = #tpu.pipeline_mode<synchronous>, transform_indices = @transform_1, window_bounds = array<i64: 2, 32, 128>}, {transform_indices = @transform_2, window_bounds = array<i64: 128, 1>}, {transform_indices = @transform_3, window_bounds = array<i64: 1, 128, 128>}, {transform_indices = @transform_4, window_bounds = array<i64: 1, 1, 1, 128>}, {transform_indices = @transform_5, window_bounds = array<i64: 1, 1, 1, 128>}]} {
    %c128_i32 = arith.constant 128 : i32
    %0 = arith.muli %arg1, %c128_i32 : i32
    %c0_i32 = arith.constant 0 : i32
    %1 = arith.addi %0, %c0_i32 : i32
    %2 = tpu.assume_multiple %1, 16 : i32
    %c0 = arith.constant 0 : index
    %3 = arith.index_cast %2 : i32 to index
    %c0_0 = arith.constant 0 : index
    %4 = vector.load %arg2[%c0, %3, %c0_0] : memref<1x144x32xbf16, #tpu.memory_space<vmem>>, vector<1x128x32xbf16>
    %5 = vector.shape_cast %4 : vector<1x128x32xbf16> to vector<128x32xbf16>
    %c0_1 = arith.constant 0 : index
    %c0_2 = arith.constant 0 : index
    %c0_3 = arith.constant 0 : index
    %6 = vector.load %arg3[%c0_1, %c0_2, %c0_3] : memref<2x32x128xbf16, #tpu.memory_space<vmem>>, vector<1x32x128xbf16>
    %7 = vector.shape_cast %6 : vector<1x32x128xbf16> to vector<32x128xbf16>
    %cst = arith.constant dense<0.000000e+00> : vector<128x128xf32>
    %8 = tpu.matmul %5, %7, %cst {dimension_numbers = #tpu.dot_dimension_numbers<[1], [0], [0], [1], [0, 0, 1, 1], [], []>} : vector<128x32xbf16>, vector<32x128xbf16>, vector<128x128xf32> -> vector<128x128xf32>
    %c0_4 = arith.constant 0 : index
    %c0_5 = arith.constant 0 : index
    %9 = vector.load %arg8[%c0_4, %c0_5] : memref<128x128xf32, #tpu.memory_space<vmem>>, vector<128x128xf32>
    tpu.vector_store %arg8[%c0_4, %c0_5], %8 {strides = array<i32>} : memref<128x128xf32, #tpu.memory_space<vmem>>, vector<128x128xf32>,
    %c16_i32 = arith.constant 16 : i32
    %10 = arith.addi %0, %c16_i32 : i32
    %11 = tpu.assume_multiple %10, 16 : i32
    %c0_6 = arith.constant 0 : index
    %12 = arith.index_cast %11 : i32 to index
    %c0_7 = arith.constant 0 : index
    %13 = vector.load %arg2[%c0_6, %12, %c0_7] : memref<1x144x32xbf16, #tpu.memory_space<vmem>>, vector<1x128x32xbf16>
    %14 = vector.shape_cast %13 : vector<1x128x32xbf16> to vector<128x32xbf16>
    %c1 = arith.constant 1 : index
    %c0_8 = arith.constant 0 : index
    %c0_9 = arith.constant 0 : index
    %15 = vector.load %arg3[%c1, %c0_8, %c0_9] : memref<2x32x128xbf16, #tpu.memory_space<vmem>>, vector<1x32x128xbf16>
    %16 = vector.shape_cast %15 : vector<1x32x128xbf16> to vector<32x128xbf16>
    %cst_10 = arith.constant dense<0.000000e+00> : vector<128x128xf32>
    %17 = tpu.matmul %14, %16, %cst_10 {dimension_numbers = #tpu.dot_dimension_numbers<[1], [0], [0], [1], [0, 0, 1, 1], [], []>} : vector<128x32xbf16>, vector<32x128xbf16>, vector<128x128xf32> -> vector<128x128xf32>
    %c0_11 = arith.constant 0 : index
    %c0_12 = arith.constant 0 : index
    %18 = vector.load %arg8[%c0_11, %c0_12] : memref<128x128xf32, #tpu.memory_space<vmem>>, vector<128x128xf32>
    %19 = arith.addf %18, %17 : vector<128x128xf32>
    %c0_13 = arith.constant 0 : index
    %c0_14 = arith.constant 0 : index
    %20 = vector.load %arg8[%c0_13, %c0_14] : memref<128x128xf32, #tpu.memory_space<vmem>>, vector<128x128xf32>
    tpu.vector_store %arg8[%c0_13, %c0_14], %19 {strides = array<i32>} : memref<128x128xf32, #tpu.memory_space<vmem>>, vector<128x128xf32>,
    %c0_15 = arith.constant 0 : index
    %c0_16 = arith.constant 0 : index
    %21 = vector.load %arg8[%c0_15, %c0_16] : memref<128x128xf32, #tpu.memory_space<vmem>>, vector<128x128xf32>
    %22 = arith.truncf %21 : vector<128x128xf32> to vector<128x128xbf16>
    %c0_17 = arith.constant 0 : index
    %c0_18 = arith.constant 0 : index
    %c0_19 = arith.constant 0 : index
    %23 = vector.load %arg5[%c0_17, %c0_18, %c0_19] : memref<1x128x128xbf16, #tpu.memory_space<vmem>>, vector<1x128x128xbf16>
    %24 = vector.shape_cast %23 : vector<1x128x128xbf16> to vector<128x128xbf16>
    %25 = vector.shape_cast %22 : vector<128x128xbf16> to vector<1x128x128xbf16>
    tpu.vector_store %arg5[%c0_17, %c0_18, %c0_19], %25 {strides = array<i32>} : memref<1x128x128xbf16, #tpu.memory_space<vmem>>, vector<1x128x128xbf16>,
    %c0_20 = arith.constant 0 : index
    %c0_21 = arith.constant 0 : index
    %26 = vector.load %arg4[%c0_20, %c0_21] : memref<128x1xf32, #tpu.memory_space<vmem>>, vector<128x1xf32>
    %27 = vector.broadcast %26 : vector<128x1xf32> to vector<128x128xf32>
    %28 = arith.mulf %21, %27 : vector<128x128xf32>
    %cst_22 = arith.constant dense<0.000000e+00> : vector<128xf32>
    %29 = vector.multi_reduction <add>, %28, %cst_22 [0] : vector<128x128xf32> to vector<128xf32>
    %30 = vector.shape_cast %29 : vector<128xf32> to vector<1x128xf32>
    %c0_23 = arith.constant 0 : index
    %c0_24 = arith.constant 0 : index
    %c0_25 = arith.constant 0 : index
    %c0_26 = arith.constant 0 : index
    %31 = vector.load %arg6[%c0_23, %c0_24, %c0_25, %c0_26] : memref<1x1x1x128xf32, #tpu.memory_space<vmem>>, vector<1x1x1x128xf32>
    %32 = vector.shape_cast %31 : vector<1x1x1x128xf32> to vector<1x128xf32>
    %33 = vector.shape_cast %30 : vector<1x128xf32> to vector<1x1x1x128xf32>
    tpu.vector_store %arg6[%c0_23, %c0_24, %c0_25, %c0_26], %33 {strides = array<i32>} : memref<1x1x1x128xf32, #tpu.memory_space<vmem>>, vector<1x1x1x128xf32>,
    %34 = arith.mulf %28, %21 : vector<128x128xf32>
    %cst_27 = arith.constant dense<0.000000e+00> : vector<128xf32>
    %35 = vector.multi_reduction <add>, %34, %cst_27 [0] : vector<128x128xf32> to vector<128xf32>
    %36 = vector.shape_cast %35 : vector<128xf32> to vector<1x128xf32>
    %c0_28 = arith.constant 0 : index
    %c0_29 = arith.constant 0 : index
    %c0_30 = arith.constant 0 : index
    %c0_31 = arith.constant 0 : index
    %37 = vector.load %arg7[%c0_28, %c0_29, %c0_30, %c0_31] : memref<1x1x1x128xf32, #tpu.memory_space<vmem>>, vector<1x1x1x128xf32>
    %38 = vector.shape_cast %37 : vector<1x1x1x128xf32> to vector<1x128xf32>
    %39 = vector.shape_cast %36 : vector<1x128xf32> to vector<1x1x1x128xf32>
    tpu.vector_store %arg7[%c0_28, %c0_29, %c0_30, %c0_31], %39 {strides = array<i32>} : memref<1x1x1x128xf32, #tpu.memory_space<vmem>>, vector<1x1x1x128xf32>,
    return
  }
  func.func @transform_0(%arg0: i32, %arg1: i32) -> (i32, i32, i32) {
    %c0_i32 = arith.constant 0 : i32
    %c0_i32_0 = arith.constant 0 : i32
    %c0_i32_1 = arith.constant 0 : i32
    return %arg0, %c0_i32, %c0_i32_0 : i32, i32, i32
  }
  func.func @transform_1(%arg0: i32, %arg1: i32) -> (i32, i32, i32) {
    %c0_i32 = arith.constant 0 : i32
    %c0_i32_0 = arith.constant 0 : i32
    %c0_i32_1 = arith.constant 0 : i32
    %c0_i32_2 = arith.constant 0 : i32
    return %c0_i32, %c0_i32_0, %c0_i32_1 : i32, i32, i32
  }
  func.func @transform_2(%arg0: i32, %arg1: i32) -> (i32, i32) {
    %c0_i32 = arith.constant 0 : i32
    %c0_i32_0 = arith.constant 0 : i32
    return %arg1, %c0_i32 : i32, i32
  }
  func.func @transform_3(%arg0: i32, %arg1: i32) -> (i32, i32, i32) {
    %c0_i32 = arith.constant 0 : i32
    %c0_i32_0 = arith.constant 0 : i32
    return %arg0, %arg1, %c0_i32 : i32, i32, i32
  }
  func.func @transform_4(%arg0: i32, %arg1: i32) -> (i32, i32, i32, i32) {
    %c0_i32 = arith.constant 0 : i32
    %c0_i32_0 = arith.constant 0 : i32
    %c0_i32_1 = arith.constant 0 : i32
    return %arg0, %arg1, %c0_i32, %c0_i32_0 : i32, i32, i32, i32
  }
  func.func @transform_5(%arg0: i32, %arg1: i32) -> (i32, i32, i32, i32) {
    %c0_i32 = arith.constant 0 : i32
    %c0_i32_0 = arith.constant 0 : i32
    %c0_i32_1 = arith.constant 0 : i32
    return %arg0, %arg1, %c0_i32, %c0_i32_0 : i32, i32, i32, i32
  }
}

module attributes {stable_mosaic.version = 11 : i64} {
  func.func @_conv_stats_kernel(%arg0: i32, %arg1: i32, %arg2: memref<1x160x24xbf16, #tpu.memory_space<vmem>>, %arg3: memref<3x24x128xbf16, #tpu.memory_space<vmem>>, %arg4: memref<128x1xf32, #tpu.memory_space<vmem>>, %arg5: memref<1x128x128xbf16, #tpu.memory_space<vmem>>, %arg6: memref<1x1x1x128xf32, #tpu.memory_space<vmem>>, %arg7: memref<1x1x1x128xf32, #tpu.memory_space<vmem>>, %arg8: memref<128x128xf32, #tpu.memory_space<vmem>>) attributes {dimension_semantics = [#tpu.dimension_semantics<parallel>, #tpu.dimension_semantics<parallel>], iteration_bounds = array<i64: 2, 1>, scalar_prefetch = 0 : i64, scratch_operands = 1 : i64, tpu.core_type = #tpu.core_type<tc>, window_params = [{transform_indices = @transform_0, window_bounds = array<i64: 1, 160, 24>}, {pipeline_mode = #tpu.pipeline_mode<synchronous>, transform_indices = @transform_1, window_bounds = array<i64: 3, 24, 128>}, {transform_indices = @transform_2, window_bounds = array<i64: 128, 1>}, {transform_indices = @transform_3, window_bounds = array<i64: 1, 128, 128>}, {transform_indices = @transform_4, window_bounds = array<i64: 1, 1, 1, 128>}, {transform_indices = @transform_5, window_bounds = array<i64: 1, 1, 1, 128>}]} {
    %c128_i32 = arith.constant 128 : i32
    %0 = arith.muli %arg1, %c128_i32 : i32
    %c0_i32 = arith.constant 0 : i32
    %1 = arith.addi %0, %c0_i32 : i32
    %2 = tpu.assume_multiple %1, 16 : i32
    %c0 = arith.constant 0 : index
    %3 = arith.index_cast %2 : i32 to index
    %c0_0 = arith.constant 0 : index
    %4 = vector.load %arg2[%c0, %3, %c0_0] : memref<1x160x24xbf16, #tpu.memory_space<vmem>>, vector<1x128x24xbf16>
    %5 = vector.shape_cast %4 : vector<1x128x24xbf16> to vector<128x24xbf16>
    %c0_1 = arith.constant 0 : index
    %c0_2 = arith.constant 0 : index
    %c0_3 = arith.constant 0 : index
    %6 = vector.load %arg3[%c0_1, %c0_2, %c0_3] : memref<3x24x128xbf16, #tpu.memory_space<vmem>>, vector<1x24x128xbf16>
    %7 = vector.shape_cast %6 : vector<1x24x128xbf16> to vector<24x128xbf16>
    %cst = arith.constant dense<0.000000e+00> : vector<128x128xf32>
    %8 = tpu.matmul %5, %7, %cst {dimension_numbers = #tpu.dot_dimension_numbers<[1], [0], [0], [1], [0, 0, 1, 1], [], []>} : vector<128x24xbf16>, vector<24x128xbf16>, vector<128x128xf32> -> vector<128x128xf32>
    %c0_4 = arith.constant 0 : index
    %c0_5 = arith.constant 0 : index
    %9 = vector.load %arg8[%c0_4, %c0_5] : memref<128x128xf32, #tpu.memory_space<vmem>>, vector<128x128xf32>
    tpu.vector_store %arg8[%c0_4, %c0_5], %8 {strides = array<i32>} : memref<128x128xf32, #tpu.memory_space<vmem>>, vector<128x128xf32>,
    %c16_i32 = arith.constant 16 : i32
    %10 = arith.addi %0, %c16_i32 : i32
    %11 = tpu.assume_multiple %10, 16 : i32
    %c0_6 = arith.constant 0 : index
    %12 = arith.index_cast %11 : i32 to index
    %c0_7 = arith.constant 0 : index
    %13 = vector.load %arg2[%c0_6, %12, %c0_7] : memref<1x160x24xbf16, #tpu.memory_space<vmem>>, vector<1x128x24xbf16>
    %14 = vector.shape_cast %13 : vector<1x128x24xbf16> to vector<128x24xbf16>
    %c1 = arith.constant 1 : index
    %c0_8 = arith.constant 0 : index
    %c0_9 = arith.constant 0 : index
    %15 = vector.load %arg3[%c1, %c0_8, %c0_9] : memref<3x24x128xbf16, #tpu.memory_space<vmem>>, vector<1x24x128xbf16>
    %16 = vector.shape_cast %15 : vector<1x24x128xbf16> to vector<24x128xbf16>
    %cst_10 = arith.constant dense<0.000000e+00> : vector<128x128xf32>
    %17 = tpu.matmul %14, %16, %cst_10 {dimension_numbers = #tpu.dot_dimension_numbers<[1], [0], [0], [1], [0, 0, 1, 1], [], []>} : vector<128x24xbf16>, vector<24x128xbf16>, vector<128x128xf32> -> vector<128x128xf32>
    %c0_11 = arith.constant 0 : index
    %c0_12 = arith.constant 0 : index
    %18 = vector.load %arg8[%c0_11, %c0_12] : memref<128x128xf32, #tpu.memory_space<vmem>>, vector<128x128xf32>
    %19 = arith.addf %18, %17 : vector<128x128xf32>
    %c0_13 = arith.constant 0 : index
    %c0_14 = arith.constant 0 : index
    %20 = vector.load %arg8[%c0_13, %c0_14] : memref<128x128xf32, #tpu.memory_space<vmem>>, vector<128x128xf32>
    tpu.vector_store %arg8[%c0_13, %c0_14], %19 {strides = array<i32>} : memref<128x128xf32, #tpu.memory_space<vmem>>, vector<128x128xf32>,
    %c32_i32 = arith.constant 32 : i32
    %21 = arith.addi %0, %c32_i32 : i32
    %22 = tpu.assume_multiple %21, 16 : i32
    %c0_15 = arith.constant 0 : index
    %23 = arith.index_cast %22 : i32 to index
    %c0_16 = arith.constant 0 : index
    %24 = vector.load %arg2[%c0_15, %23, %c0_16] : memref<1x160x24xbf16, #tpu.memory_space<vmem>>, vector<1x128x24xbf16>
    %25 = vector.shape_cast %24 : vector<1x128x24xbf16> to vector<128x24xbf16>
    %c2 = arith.constant 2 : index
    %c0_17 = arith.constant 0 : index
    %c0_18 = arith.constant 0 : index
    %26 = vector.load %arg3[%c2, %c0_17, %c0_18] : memref<3x24x128xbf16, #tpu.memory_space<vmem>>, vector<1x24x128xbf16>
    %27 = vector.shape_cast %26 : vector<1x24x128xbf16> to vector<24x128xbf16>
    %cst_19 = arith.constant dense<0.000000e+00> : vector<128x128xf32>
    %28 = tpu.matmul %25, %27, %cst_19 {dimension_numbers = #tpu.dot_dimension_numbers<[1], [0], [0], [1], [0, 0, 1, 1], [], []>} : vector<128x24xbf16>, vector<24x128xbf16>, vector<128x128xf32> -> vector<128x128xf32>
    %c0_20 = arith.constant 0 : index
    %c0_21 = arith.constant 0 : index
    %29 = vector.load %arg8[%c0_20, %c0_21] : memref<128x128xf32, #tpu.memory_space<vmem>>, vector<128x128xf32>
    %30 = arith.addf %29, %28 : vector<128x128xf32>
    %c0_22 = arith.constant 0 : index
    %c0_23 = arith.constant 0 : index
    %31 = vector.load %arg8[%c0_22, %c0_23] : memref<128x128xf32, #tpu.memory_space<vmem>>, vector<128x128xf32>
    tpu.vector_store %arg8[%c0_22, %c0_23], %30 {strides = array<i32>} : memref<128x128xf32, #tpu.memory_space<vmem>>, vector<128x128xf32>,
    %c0_24 = arith.constant 0 : index
    %c0_25 = arith.constant 0 : index
    %32 = vector.load %arg8[%c0_24, %c0_25] : memref<128x128xf32, #tpu.memory_space<vmem>>, vector<128x128xf32>
    %33 = arith.truncf %32 : vector<128x128xf32> to vector<128x128xbf16>
    %c0_26 = arith.constant 0 : index
    %c0_27 = arith.constant 0 : index
    %c0_28 = arith.constant 0 : index
    %34 = vector.load %arg5[%c0_26, %c0_27, %c0_28] : memref<1x128x128xbf16, #tpu.memory_space<vmem>>, vector<1x128x128xbf16>
    %35 = vector.shape_cast %34 : vector<1x128x128xbf16> to vector<128x128xbf16>
    %36 = vector.shape_cast %33 : vector<128x128xbf16> to vector<1x128x128xbf16>
    tpu.vector_store %arg5[%c0_26, %c0_27, %c0_28], %36 {strides = array<i32>} : memref<1x128x128xbf16, #tpu.memory_space<vmem>>, vector<1x128x128xbf16>,
    %c0_29 = arith.constant 0 : index
    %c0_30 = arith.constant 0 : index
    %37 = vector.load %arg4[%c0_29, %c0_30] : memref<128x1xf32, #tpu.memory_space<vmem>>, vector<128x1xf32>
    %38 = vector.broadcast %37 : vector<128x1xf32> to vector<128x128xf32>
    %39 = arith.mulf %32, %38 : vector<128x128xf32>
    %cst_31 = arith.constant dense<0.000000e+00> : vector<128xf32>
    %40 = vector.multi_reduction <add>, %39, %cst_31 [0] : vector<128x128xf32> to vector<128xf32>
    %41 = vector.shape_cast %40 : vector<128xf32> to vector<1x128xf32>
    %c0_32 = arith.constant 0 : index
    %c0_33 = arith.constant 0 : index
    %c0_34 = arith.constant 0 : index
    %c0_35 = arith.constant 0 : index
    %42 = vector.load %arg6[%c0_32, %c0_33, %c0_34, %c0_35] : memref<1x1x1x128xf32, #tpu.memory_space<vmem>>, vector<1x1x1x128xf32>
    %43 = vector.shape_cast %42 : vector<1x1x1x128xf32> to vector<1x128xf32>
    %44 = vector.shape_cast %41 : vector<1x128xf32> to vector<1x1x1x128xf32>
    tpu.vector_store %arg6[%c0_32, %c0_33, %c0_34, %c0_35], %44 {strides = array<i32>} : memref<1x1x1x128xf32, #tpu.memory_space<vmem>>, vector<1x1x1x128xf32>,
    %45 = arith.mulf %39, %32 : vector<128x128xf32>
    %cst_36 = arith.constant dense<0.000000e+00> : vector<128xf32>
    %46 = vector.multi_reduction <add>, %45, %cst_36 [0] : vector<128x128xf32> to vector<128xf32>
    %47 = vector.shape_cast %46 : vector<128xf32> to vector<1x128xf32>
    %c0_37 = arith.constant 0 : index
    %c0_38 = arith.constant 0 : index
    %c0_39 = arith.constant 0 : index
    %c0_40 = arith.constant 0 : index
    %48 = vector.load %arg7[%c0_37, %c0_38, %c0_39, %c0_40] : memref<1x1x1x128xf32, #tpu.memory_space<vmem>>, vector<1x1x1x128xf32>
    %49 = vector.shape_cast %48 : vector<1x1x1x128xf32> to vector<1x128xf32>
    %50 = vector.shape_cast %47 : vector<1x128xf32> to vector<1x1x1x128xf32>
    tpu.vector_store %arg7[%c0_37, %c0_38, %c0_39, %c0_40], %50 {strides = array<i32>} : memref<1x1x1x128xf32, #tpu.memory_space<vmem>>, vector<1x1x1x128xf32>,
    return
  }
  func.func @transform_0(%arg0: i32, %arg1: i32) -> (i32, i32, i32) {
    %c0_i32 = arith.constant 0 : i32
    %c0_i32_0 = arith.constant 0 : i32
    %c0_i32_1 = arith.constant 0 : i32
    return %arg0, %c0_i32, %c0_i32_0 : i32, i32, i32
  }
  func.func @transform_1(%arg0: i32, %arg1: i32) -> (i32, i32, i32) {
    %c0_i32 = arith.constant 0 : i32
    %c0_i32_0 = arith.constant 0 : i32
    %c0_i32_1 = arith.constant 0 : i32
    %c0_i32_2 = arith.constant 0 : i32
    return %c0_i32, %c0_i32_0, %c0_i32_1 : i32, i32, i32
  }
  func.func @transform_2(%arg0: i32, %arg1: i32) -> (i32, i32) {
    %c0_i32 = arith.constant 0 : i32
    %c0_i32_0 = arith.constant 0 : i32
    return %arg1, %c0_i32 : i32, i32
  }
  func.func @transform_3(%arg0: i32, %arg1: i32) -> (i32, i32, i32) {
    %c0_i32 = arith.constant 0 : i32
    %c0_i32_0 = arith.constant 0 : i32
    return %arg0, %arg1, %c0_i32 : i32, i32, i32
  }
  func.func @transform_4(%arg0: i32, %arg1: i32) -> (i32, i32, i32, i32) {
    %c0_i32 = arith.constant 0 : i32
    %c0_i32_0 = arith.constant 0 : i32
    %c0_i32_1 = arith.constant 0 : i32
    return %arg0, %arg1, %c0_i32, %c0_i32_0 : i32, i32, i32, i32
  }
  func.func @transform_5(%arg0: i32, %arg1: i32) -> (i32, i32, i32, i32) {
    %c0_i32 = arith.constant 0 : i32
    %c0_i32_0 = arith.constant 0 : i32
    %c0_i32_1 = arith.constant 0 : i32
    return %arg0, %arg1, %c0_i32, %c0_i32_0 : i32, i32, i32, i32
  }
}

module attributes {stable_mosaic.version = 11 : i64} {
  func.func @_bn_act_kernel(%arg0: i32, %arg1: i32, %arg2: memref<1x128x128xbf16, #tpu.memory_space<vmem>>, %arg3: memref<1x128xf32, #tpu.memory_space<vmem>>, %arg4: memref<1x128xf32, #tpu.memory_space<vmem>>, %arg5: memref<1x128x128xbf16, #tpu.memory_space<vmem>>, %arg6: memref<1x128xf32, #tpu.memory_space<vmem>>, %arg7: memref<1x128xf32, #tpu.memory_space<vmem>>, %arg8: memref<1x128x128xf32, #tpu.memory_space<vmem>>) attributes {dimension_semantics = [#tpu.dimension_semantics<parallel>, #tpu.dimension_semantics<parallel>], iteration_bounds = array<i64: 2, 1>, scalar_prefetch = 0 : i64, scratch_operands = 0 : i64, tpu.core_type = #tpu.core_type<tc>, window_params = [{transform_indices = @transform_0, window_bounds = array<i64: 1, 128, 128>}, {pipeline_mode = #tpu.pipeline_mode<synchronous>, transform_indices = @transform_1, window_bounds = array<i64: 1, 128>}, {pipeline_mode = #tpu.pipeline_mode<synchronous>, transform_indices = @transform_2, window_bounds = array<i64: 1, 128>}, {transform_indices = @transform_3, window_bounds = array<i64: 1, 128, 128>}, {pipeline_mode = #tpu.pipeline_mode<synchronous>, transform_indices = @transform_4, window_bounds = array<i64: 1, 128>}, {pipeline_mode = #tpu.pipeline_mode<synchronous>, transform_indices = @transform_5, window_bounds = array<i64: 1, 128>}, {transform_indices = @transform_6, window_bounds = array<i64: 1, 128, 128>}]} {
    %c0 = arith.constant 0 : index
    %c0_0 = arith.constant 0 : index
    %c0_1 = arith.constant 0 : index
    %0 = vector.load %arg2[%c0, %c0_0, %c0_1] : memref<1x128x128xbf16, #tpu.memory_space<vmem>>, vector<1x128x128xbf16>
    %1 = vector.shape_cast %0 : vector<1x128x128xbf16> to vector<128x128xbf16>
    %2 = arith.extf %1 : vector<128x128xbf16> to vector<128x128xf32>
    %c0_2 = arith.constant 0 : index
    %c0_3 = arith.constant 0 : index
    %3 = vector.load %arg3[%c0_2, %c0_3] : memref<1x128xf32, #tpu.memory_space<vmem>>, vector<1x128xf32>
    %4 = vector.broadcast %3 : vector<1x128xf32> to vector<128x128xf32>
    %5 = arith.mulf %2, %4 : vector<128x128xf32>
    %c0_4 = arith.constant 0 : index
    %c0_5 = arith.constant 0 : index
    %6 = vector.load %arg4[%c0_4, %c0_5] : memref<1x128xf32, #tpu.memory_space<vmem>>, vector<1x128xf32>
    %7 = vector.broadcast %6 : vector<1x128xf32> to vector<128x128xf32>
    %8 = arith.addf %5, %7 : vector<128x128xf32>
    %c0_6 = arith.constant 0 : index
    %c0_7 = arith.constant 0 : index
    %c0_8 = arith.constant 0 : index
    %9 = vector.load %arg5[%c0_6, %c0_7, %c0_8] : memref<1x128x128xbf16, #tpu.memory_space<vmem>>, vector<1x128x128xbf16>
    %10 = vector.shape_cast %9 : vector<1x128x128xbf16> to vector<128x128xbf16>
    %11 = arith.extf %10 : vector<128x128xbf16> to vector<128x128xf32>
    %c0_9 = arith.constant 0 : index
    %c0_10 = arith.constant 0 : index
    %12 = vector.load %arg6[%c0_9, %c0_10] : memref<1x128xf32, #tpu.memory_space<vmem>>, vector<1x128xf32>
    %13 = vector.broadcast %12 : vector<1x128xf32> to vector<128x128xf32>
    %14 = arith.mulf %11, %13 : vector<128x128xf32>
    %c0_11 = arith.constant 0 : index
    %c0_12 = arith.constant 0 : index
    %15 = vector.load %arg7[%c0_11, %c0_12] : memref<1x128xf32, #tpu.memory_space<vmem>>, vector<1x128xf32>
    %16 = vector.broadcast %15 : vector<1x128xf32> to vector<128x128xf32>
    %17 = arith.addf %14, %16 : vector<128x128xf32>
    %18 = arith.addf %8, %17 : vector<128x128xf32>
    %cst = arith.constant 0.000000e+00 : f32
    %19 = vector.broadcast %cst : f32 to vector<128x128xf32>
    %20 = arith.maximumf %18, %19 : vector<128x128xf32>
    %c0_13 = arith.constant 0 : index
    %c0_14 = arith.constant 0 : index
    %c0_15 = arith.constant 0 : index
    %21 = vector.load %arg8[%c0_13, %c0_14, %c0_15] : memref<1x128x128xf32, #tpu.memory_space<vmem>>, vector<1x128x128xf32>
    %22 = vector.shape_cast %21 : vector<1x128x128xf32> to vector<128x128xf32>
    %23 = vector.shape_cast %20 : vector<128x128xf32> to vector<1x128x128xf32>
    tpu.vector_store %arg8[%c0_13, %c0_14, %c0_15], %23 {strides = array<i32>} : memref<1x128x128xf32, #tpu.memory_space<vmem>>, vector<1x128x128xf32>,
    return
  }
  func.func @transform_0(%arg0: i32, %arg1: i32) -> (i32, i32, i32) {
    %c0_i32 = arith.constant 0 : i32
    %c0_i32_0 = arith.constant 0 : i32
    return %arg0, %arg1, %c0_i32 : i32, i32, i32
  }
  func.func @transform_1(%arg0: i32, %arg1: i32) -> (i32, i32) {
    %c0_i32 = arith.constant 0 : i32
    %c0_i32_0 = arith.constant 0 : i32
    %c0_i32_1 = arith.constant 0 : i32
    return %c0_i32, %c0_i32_0 : i32, i32
  }
  func.func @transform_2(%arg0: i32, %arg1: i32) -> (i32, i32) {
    %c0_i32 = arith.constant 0 : i32
    %c0_i32_0 = arith.constant 0 : i32
    %c0_i32_1 = arith.constant 0 : i32
    return %c0_i32, %c0_i32_0 : i32, i32
  }
  func.func @transform_3(%arg0: i32, %arg1: i32) -> (i32, i32, i32) {
    %c0_i32 = arith.constant 0 : i32
    %c0_i32_0 = arith.constant 0 : i32
    return %arg0, %arg1, %c0_i32 : i32, i32, i32
  }
  func.func @transform_4(%arg0: i32, %arg1: i32) -> (i32, i32) {
    %c0_i32 = arith.constant 0 : i32
    %c0_i32_0 = arith.constant 0 : i32
    %c0_i32_1 = arith.constant 0 : i32
    return %c0_i32, %c0_i32_0 : i32, i32
  }
  func.func @transform_5(%arg0: i32, %arg1: i32) -> (i32, i32) {
    %c0_i32 = arith.constant 0 : i32
    %c0_i32_0 = arith.constant 0 : i32
    %c0_i32_1 = arith.constant 0 : i32
    return %c0_i32, %c0_i32_0 : i32, i32
  }
  func.func @transform_6(%arg0: i32, %arg1: i32) -> (i32, i32, i32) {
    %c0_i32 = arith.constant 0 : i32
    %c0_i32_0 = arith.constant 0 : i32
    return %arg0, %arg1, %c0_i32 : i32, i32, i32
  }
}

module attributes {stable_mosaic.version = 11 : i64} {
  func.func @_conv_stats_kernel(%arg0: i32, %arg1: i32, %arg2: memref<1x128x4xbf16, #tpu.memory_space<vmem>>, %arg3: memref<1x4x128xbf16, #tpu.memory_space<vmem>>, %arg4: memref<128x1xf32, #tpu.memory_space<vmem>>, %arg5: memref<1x128x128xbf16, #tpu.memory_space<vmem>>, %arg6: memref<1x1x1x128xf32, #tpu.memory_space<vmem>>, %arg7: memref<1x1x1x128xf32, #tpu.memory_space<vmem>>, %arg8: memref<128x128xf32, #tpu.memory_space<vmem>>) attributes {dimension_semantics = [#tpu.dimension_semantics<parallel>, #tpu.dimension_semantics<parallel>], iteration_bounds = array<i64: 2, 1>, scalar_prefetch = 0 : i64, scratch_operands = 1 : i64, tpu.core_type = #tpu.core_type<tc>, window_params = [{transform_indices = @transform_0, window_bounds = array<i64: 1, 128, 4>}, {pipeline_mode = #tpu.pipeline_mode<synchronous>, transform_indices = @transform_1, window_bounds = array<i64: 1, 4, 128>}, {transform_indices = @transform_2, window_bounds = array<i64: 128, 1>}, {transform_indices = @transform_3, window_bounds = array<i64: 1, 128, 128>}, {transform_indices = @transform_4, window_bounds = array<i64: 1, 1, 1, 128>}, {transform_indices = @transform_5, window_bounds = array<i64: 1, 1, 1, 128>}]} {
    %c128_i32 = arith.constant 128 : i32
    %0 = arith.muli %arg1, %c128_i32 : i32
    %c0_i32 = arith.constant 0 : i32
    %1 = arith.addi %0, %c0_i32 : i32
    %2 = tpu.assume_multiple %1, 16 : i32
    %c0 = arith.constant 0 : index
    %3 = arith.index_cast %2 : i32 to index
    %c0_0 = arith.constant 0 : index
    %4 = vector.load %arg2[%c0, %3, %c0_0] : memref<1x128x4xbf16, #tpu.memory_space<vmem>>, vector<1x128x4xbf16>
    %5 = vector.shape_cast %4 : vector<1x128x4xbf16> to vector<128x4xbf16>
    %c0_1 = arith.constant 0 : index
    %c0_2 = arith.constant 0 : index
    %c0_3 = arith.constant 0 : index
    %6 = vector.load %arg3[%c0_1, %c0_2, %c0_3] : memref<1x4x128xbf16, #tpu.memory_space<vmem>>, vector<1x4x128xbf16>
    %7 = vector.shape_cast %6 : vector<1x4x128xbf16> to vector<4x128xbf16>
    %cst = arith.constant dense<0.000000e+00> : vector<128x128xf32>
    %8 = tpu.matmul %5, %7, %cst {dimension_numbers = #tpu.dot_dimension_numbers<[1], [0], [0], [1], [0, 0, 1, 1], [], []>} : vector<128x4xbf16>, vector<4x128xbf16>, vector<128x128xf32> -> vector<128x128xf32>
    %c0_4 = arith.constant 0 : index
    %c0_5 = arith.constant 0 : index
    %9 = vector.load %arg8[%c0_4, %c0_5] : memref<128x128xf32, #tpu.memory_space<vmem>>, vector<128x128xf32>
    tpu.vector_store %arg8[%c0_4, %c0_5], %8 {strides = array<i32>} : memref<128x128xf32, #tpu.memory_space<vmem>>, vector<128x128xf32>,
    %c0_6 = arith.constant 0 : index
    %c0_7 = arith.constant 0 : index
    %10 = vector.load %arg8[%c0_6, %c0_7] : memref<128x128xf32, #tpu.memory_space<vmem>>, vector<128x128xf32>
    %11 = arith.truncf %10 : vector<128x128xf32> to vector<128x128xbf16>
    %c0_8 = arith.constant 0 : index
    %c0_9 = arith.constant 0 : index
    %c0_10 = arith.constant 0 : index
    %12 = vector.load %arg5[%c0_8, %c0_9, %c0_10] : memref<1x128x128xbf16, #tpu.memory_space<vmem>>, vector<1x128x128xbf16>
    %13 = vector.shape_cast %12 : vector<1x128x128xbf16> to vector<128x128xbf16>
    %14 = vector.shape_cast %11 : vector<128x128xbf16> to vector<1x128x128xbf16>
    tpu.vector_store %arg5[%c0_8, %c0_9, %c0_10], %14 {strides = array<i32>} : memref<1x128x128xbf16, #tpu.memory_space<vmem>>, vector<1x128x128xbf16>,
    %c0_11 = arith.constant 0 : index
    %c0_12 = arith.constant 0 : index
    %15 = vector.load %arg4[%c0_11, %c0_12] : memref<128x1xf32, #tpu.memory_space<vmem>>, vector<128x1xf32>
    %16 = vector.broadcast %15 : vector<128x1xf32> to vector<128x128xf32>
    %17 = arith.mulf %10, %16 : vector<128x128xf32>
    %cst_13 = arith.constant dense<0.000000e+00> : vector<128xf32>
    %18 = vector.multi_reduction <add>, %17, %cst_13 [0] : vector<128x128xf32> to vector<128xf32>
    %19 = vector.shape_cast %18 : vector<128xf32> to vector<1x128xf32>
    %c0_14 = arith.constant 0 : index
    %c0_15 = arith.constant 0 : index
    %c0_16 = arith.constant 0 : index
    %c0_17 = arith.constant 0 : index
    %20 = vector.load %arg6[%c0_14, %c0_15, %c0_16, %c0_17] : memref<1x1x1x128xf32, #tpu.memory_space<vmem>>, vector<1x1x1x128xf32>
    %21 = vector.shape_cast %20 : vector<1x1x1x128xf32> to vector<1x128xf32>
    %22 = vector.shape_cast %19 : vector<1x128xf32> to vector<1x1x1x128xf32>
    tpu.vector_store %arg6[%c0_14, %c0_15, %c0_16, %c0_17], %22 {strides = array<i32>} : memref<1x1x1x128xf32, #tpu.memory_space<vmem>>, vector<1x1x1x128xf32>,
    %23 = arith.mulf %17, %10 : vector<128x128xf32>
    %cst_18 = arith.constant dense<0.000000e+00> : vector<128xf32>
    %24 = vector.multi_reduction <add>, %23, %cst_18 [0] : vector<128x128xf32> to vector<128xf32>
    %25 = vector.shape_cast %24 : vector<128xf32> to vector<1x128xf32>
    %c0_19 = arith.constant 0 : index
    %c0_20 = arith.constant 0 : index
    %c0_21 = arith.constant 0 : index
    %c0_22 = arith.constant 0 : index
    %26 = vector.load %arg7[%c0_19, %c0_20, %c0_21, %c0_22] : memref<1x1x1x128xf32, #tpu.memory_space<vmem>>, vector<1x1x1x128xf32>
    %27 = vector.shape_cast %26 : vector<1x1x1x128xf32> to vector<1x128xf32>
    %28 = vector.shape_cast %25 : vector<1x128xf32> to vector<1x1x1x128xf32>
    tpu.vector_store %arg7[%c0_19, %c0_20, %c0_21, %c0_22], %28 {strides = array<i32>} : memref<1x1x1x128xf32, #tpu.memory_space<vmem>>, vector<1x1x1x128xf32>,
    return
  }
  func.func @transform_0(%arg0: i32, %arg1: i32) -> (i32, i32, i32) {
    %c0_i32 = arith.constant 0 : i32
    %c0_i32_0 = arith.constant 0 : i32
    %c0_i32_1 = arith.constant 0 : i32
    return %arg0, %c0_i32, %c0_i32_0 : i32, i32, i32
  }
  func.func @transform_1(%arg0: i32, %arg1: i32) -> (i32, i32, i32) {
    %c0_i32 = arith.constant 0 : i32
    %c0_i32_0 = arith.constant 0 : i32
    %c0_i32_1 = arith.constant 0 : i32
    %c0_i32_2 = arith.constant 0 : i32
    return %c0_i32, %c0_i32_0, %c0_i32_1 : i32, i32, i32
  }
  func.func @transform_2(%arg0: i32, %arg1: i32) -> (i32, i32) {
    %c0_i32 = arith.constant 0 : i32
    %c0_i32_0 = arith.constant 0 : i32
    return %arg1, %c0_i32 : i32, i32
  }
  func.func @transform_3(%arg0: i32, %arg1: i32) -> (i32, i32, i32) {
    %c0_i32 = arith.constant 0 : i32
    %c0_i32_0 = arith.constant 0 : i32
    return %arg0, %arg1, %c0_i32 : i32, i32, i32
  }
  func.func @transform_4(%arg0: i32, %arg1: i32) -> (i32, i32, i32, i32) {
    %c0_i32 = arith.constant 0 : i32
    %c0_i32_0 = arith.constant 0 : i32
    %c0_i32_1 = arith.constant 0 : i32
    return %arg0, %arg1, %c0_i32, %c0_i32_0 : i32, i32, i32, i32
  }
  func.func @transform_5(%arg0: i32, %arg1: i32) -> (i32, i32, i32, i32) {
    %c0_i32 = arith.constant 0 : i32
    %c0_i32_0 = arith.constant 0 : i32
    %c0_i32_1 = arith.constant 0 : i32
    return %arg0, %arg1, %c0_i32, %c0_i32_0 : i32, i32, i32, i32
  }
}

</mosaic_0001>

<bundles_post_ra>
// kernel: basic_block_forward.6
= control target key start
LH: loop header
LB: loop body
LE: loop exit
PB: predicated region body
PF: predicated region fallthrough
CT: control target
= control target key end

     0   :  { %s672_s12 = smov 0   ;;  %s674_s13 = smov 0   ;;  %s774_s0 = inlined_call_operand.vmem [shape: bf16[2,128,128], index: 0, kind: input, shape index: {}]   ;;  %s775_s1 = inlined_call_operand.vmem [shape: f32[1,128], index: 1, kind: input, shape index: {}]   ;;  %s776_s2 = inlined_call_operand.vmem [shape: f32[1,128], index: 2, kind: input, shape index: {}]   ;;  %s777_s3 = inlined_call_operand.vmem [shape: bf16[2,128,128], index: 3, kind: output, shape index: {}]  }
   0x1   :  { %s676_s14 = smov 0  }
   0x2 LB: > { %s25_s15 = sadd.s32 1, %s646_s13  ;;  %p475_p0 = scmp.ge.s32.totalorder %s650_s14, 1  ;;  %s650_s14 = sphi %s676_s14, %s13_s14   ;;  %s646_s13 = sphi %s674_s13, %s779_s13   ;;  %s642_s12 = sphi %s672_s12, %s778_s12  }
   0x3   : > { %p27_p1 = scmp.ge.s32.totalorder %s25_s15, 2  ;;  %p158_p2 = scmp.lt.s32.totalorder %s650_s14, 3 }
   0x5   : > { %s781_s15 = smov (%p27_p1, %s25_s15), 0  ;;  %p159_p3 = pnand %p475_p0, %p158_p2 }
   0x6   : > { %p191_p4 = scmp.lt.s32.totalorder (!%p159_p3), %s642_s12, 1  ;;  %v703_v0 = vld [vmem:[%s775_s1] ss:$0 sm:$0xff] (!%p159_p3) }
   0x7   : > { %162 = sbr.rel (%p159_p3) target bundleno = 40 (0x28), region = 32  ;;  %v712_v9 = vld [vmem:[%s776_s2] ss:$0 sm:$0xff] (!%p159_p3) }
   0xe   : > { %s783_s12 = smov (!%p191_p4, %s642_s12), 1 }
   0xf   : > { %s500_s16 = sshll.u32 %s783_s12, 6 }
  0x10   : > { %s698_s19 = scalar_lea.vmem %s774_s0, %s500_s16  ;;  %s737_s26 = scalar_lea.vmem %s777_s3, %s500_s16 }
  0x11   : > { %v519_v1 = vld [vmem:[%s698_s19] sm:$0xff]   ;;  %v590_v2 = vld [vmem:[%s698_s19 + $0x8] sm:$0xff]   ;;  %v591_v3 = vld [vmem:[%s698_s19 + $0x10] sm:$0xff]  }
  0x12   : > { %v520_v4 = vunpack.c.l.bf16 %v519_v1  ;;  %v521_v5 = vunpack.c.h.bf16 %v519_v1  ;;  %v524_v6 = vunpack.c.l.bf16 %v590_v2  ;;  %v525_v7 = vunpack.c.h.bf16 %v590_v2  ;;  %v592_v8 = vld [vmem:[%s698_s19 + $0x18] sm:$0xff]   ;;  %v593_v30 = vld [vmem:[%s698_s19 + $0x20] sm:$0xff]   ;;  %v594_v35 = vld [vmem:[%s698_s19 + $0x28] sm:$0xff]  }
  0x13   : > { %v528_v10 = vunpack.c.l.bf16 %v591_v3  ;;  %v529_v11 = vunpack.c.h.bf16 %v591_v3  ;;  %v532_v12 = vunpack.c.l.bf16 %v592_v8  ;;  %v533_v13 = vunpack.c.h.bf16 %v592_v8  ;;  %v595_v40 = vld [vmem:[%s698_s19 + $0x30] sm:$0xff]   ;;  %v596_v45 = vld [vmem:[%s698_s19 + $0x38] sm:$0xff]  }
  0x14   : > { %v249_v14 = vmul.f32 %v520_v4, %v703_v0  ;;  %v250_v15 = vmul.f32 %v521_v5, %v703_v0  ;;  %v251_v16 = vmul.f32 %v524_v6, %v703_v0  ;;  %v252_v17 = vmul.f32 %v525_v7, %v703_v0 }
  0x15   : > { %v253_v18 = vmul.f32 %v528_v10, %v703_v0  ;;  %v254_v19 = vmul.f32 %v529_v11, %v703_v0  ;;  %v255_v20 = vmul.f32 %v532_v12, %v703_v0  ;;  %v256_v21 = vmul.f32 %v533_v13, %v703_v0 }
  0x16   : > { %v272_v22 = vadd.f32 %v712_v9, %v249_v14  ;;  %v273_v23 = vadd.f32 %v712_v9, %v250_v15  ;;  %v274_v24 = vadd.f32 %v712_v9, %v251_v16  ;;  %v275_v25 = vadd.f32 %v712_v9, %v252_v17 }
  0x17   : > { %v276_v26 = vadd.f32 %v712_v9, %v253_v18  ;;  %v277_v27 = vadd.f32 %v712_v9, %v254_v19  ;;  %v278_v28 = vadd.f32 %v712_v9, %v255_v20  ;;  %v279_v29 = vadd.f32 %v712_v9, %v256_v21 }
  0x18   : > { %v288_v31 = vmax.f32 %v272_v22, 0.0  ;;  %v289_v32 = vmax.f32 %v273_v23, 0.0  ;;  %v290_v33 = vmax.f32 %v274_v24, 0.0  ;;  %v291_v34 = vmax.f32 %v275_v25, 0.0 }
  0x19   : > { %v292_v36 = vmax.f32 %v276_v26, 0.0  ;;  %v293_v37 = vmax.f32 %v277_v27, 0.0  ;;  %v294_v38 = vmax.f32 %v278_v28, 0.0  ;;  %v295_v39 = vmax.f32 %v279_v29, 0.0 }
  0x1a   : > { %v553_v41 = vpack.c.bf16 %v289_v32, %v288_v31  ;;  %v558_v42 = vpack.c.bf16 %v291_v34, %v290_v33  ;;  %v536_v43 = vunpack.c.l.bf16 %v593_v30  ;;  %v537_v44 = vunpack.c.h.bf16 %v593_v30 }
  0x1b   : > { %v563_v46 = vpack.c.bf16 %v293_v37, %v292_v36  ;;  %v568_v47 = vpack.c.bf16 %v295_v39, %v294_v38  ;;  %v540_v48 = vunpack.c.l.bf16 %v594_v35  ;;  %v541_v49 = vunpack.c.h.bf16 %v594_v35 }
  0x1c   : > { %554 = vst [vmem:[%s737_s26] sm:$0xff] %v553_v41   ;;  %597 = vst [vmem:[%s737_s26 + $0x8] sm:$0xff] %v558_v42   ;;  %v257_v50 = vmul.f32 %v536_v43, %v703_v0  ;;  %v258_v51 = vmul.f32 %v537_v44, %v703_v0  ;;  %v544_v52 = vunpack.c.l.bf16 %v595_v40  ;;  %v545_v53 = vunpack.c.h.bf16 %v595_v40 }
  0x1d   : > { %598 = vst [vmem:[%s737_s26 + $0x10] sm:$0xff] %v563_v46   ;;  %599 = vst [vmem:[%s737_s26 + $0x18] sm:$0xff] %v568_v47   ;;  %v259_v54 = vmul.f32 %v540_v48, %v703_v0  ;;  %v260_v55 = vmul.f32 %v541_v49, %v703_v0  ;;  %v548_v56 = vunpack.c.l.bf16 %v596_v45  ;;  %v549_v57 = vunpack.c.h.bf16 %v596_v45 }
  0x1e   : > { %v280_v58 = vadd.f32 %v712_v9, %v257_v50  ;;  %v281_v59 = vadd.f32 %v712_v9, %v258_v51  ;;  %v261_v60 = vmul.f32 %v544_v52, %v703_v0  ;;  %v262_v61 = vmul.f32 %v545_v53, %v703_v0 }
  0x1f   : > { %v282_v62 = vadd.f32 %v712_v9, %v259_v54  ;;  %v283_v63 = vadd.f32 %v712_v9, %v260_v55  ;;  %v263_v1 = vmul.f32 %v548_v56, %v703_v0  ;;  %v264_v2 = vmul.f32 %v549_v57, %v703_v0 }
  0x20   : > { %v296_v3 = vmax.f32 %v280_v58, 0.0  ;;  %v297_v4 = vmax.f32 %v281_v59, 0.0  ;;  %v284_v5 = vadd.f32 %v712_v9, %v261_v60  ;;  %v285_v6 = vadd.f32 %v712_v9, %v262_v61 }
  0x21   : > { %v298_v7 = vmax.f32 %v282_v62, 0.0  ;;  %v299_v8 = vmax.f32 %v283_v63, 0.0  ;;  %v286_v10 = vadd.f32 %v712_v9, %v263_v1  ;;  %v287_v11 = vadd.f32 %v712_v9, %v264_v2 }
  0x22   : > { %v573_v12 = vpack.c.bf16 %v297_v4, %v296_v3  ;;  %v300_v13 = vmax.f32 %v284_v5, 0.0  ;;  %v301_v14 = vmax.f32 %v285_v6, 0.0 }
  0x23   : > { %v578_v15 = vpack.c.bf16 %v299_v8, %v298_v7  ;;  %v302_v0 = vmax.f32 %v286_v10, 0.0  ;;  %v303_v16 = vmax.f32 %v287_v11, 0.0 }
  0x24   : > { %600 = vst [vmem:[%s737_s26 + $0x20] sm:$0xff] %v573_v12   ;;  %v583_v17 = vpack.c.bf16 %v301_v14, %v300_v13 }
  0x25   : > { %601 = vst [vmem:[%s737_s26 + $0x28] sm:$0xff] %v578_v15   ;;  %v588_v18 = vpack.c.bf16 %v303_v16, %v302_v0 }
  0x26   : > { %602 = vst [vmem:[%s737_s26 + $0x30] sm:$0xff] %v583_v17  }
  0x27   : > { %603 = vst [vmem:[%s737_s26 + $0x38] sm:$0xff] %v588_v18  }
  0x28 PF: > { %s13_s14 = sadd.s32 1, %s650_s14   ;;  %s778_s12 = smov %s646_s13 }
  0x29   : > { %p10_p5 = scmp.ge.s32.totalorder %s13_s14, 4   ;;  %s779_s13 = smov %s781_s15 }
  0x2b   :  { %12 = sbr.rel (!%p10_p5) target bundleno = 2 (0x2), region = 62 }

// kernel: basic_block_forward.5
= control target key start
LH: loop header
LB: loop body
LE: loop exit
PB: predicated region body
PF: predicated region fallthrough
CT: control target
= control target key end

     0   :  { %s1530_s18 = smov 0   ;;  %s1532_s19 = smov 0   ;;  %s1682_s0 = inlined_call_operand.vmem [shape: bf16[2,144,32], index: 0, kind: input, shape index: {}]   ;;  %s1683_s1 = inlined_call_operand.vmem [shape: bf16[2,32,128], index: 1, kind: input, shape index: {}]   ;;  %s1684_s2 = inlined_call_operand.vmem [shape: f32[128,1], index: 2, kind: input, shape index: {}]   ;;  %s1685_s3 = inlined_call_operand.vmem [shape: bf16[2,128,128], index: 3, kind: output, shape index: {0}]   ;;  %s1686_s4 = inlined_call_operand.vmem [shape: f32[2,1,1,128], index: 4, kind: output, shape index: {1}]   ;;  %s1687_s5 = inlined_call_operand.vmem [shape: f32[2,1,1,128], index: 5, kind: output, shape index: {2}]  }
   0x1   :  { %s1534_s20 = smov 0  }
   0x2 LB: > { %s28_s21 = sadd.s32 1, %s1493_s19  ;;  %p1209_p0 = scmp.ge.s32.totalorder %s1497_s20, 1  ;;  %s1497_s20 = sphi %s1534_s20, %s16_s20   ;;  %s1493_s19 = sphi %s1532_s19, %s1689_s19   ;;  %s1489_s18 = sphi %s1530_s18, %s1688_s18  }
   0x3   : > { %p30_p1 = scmp.ge.s32.totalorder %s28_s21, 2  ;;  %p221_p2 = scmp.lt.s32.totalorder %s1497_s20, 3 }
   0x5   : > { %s1691_s21 = smov (%p30_p1, %s28_s21), 0  ;;  %p222_p3 = pnand %p1209_p0, %p221_p2 }
   0x6   : > { %v1455_v0 = vld [vmem:[%s1683_s1] sm:$0xff] (!%p222_p3)   ;;  %p270_p4 = scmp.lt.s32.totalorder (!%p222_p3), %s1489_s18, 1  ;;  %v1456_v1 = vld [vmem:[%s1683_s1 + $0x10] sm:$0xff] (!%p222_p3)   ;;  %v1457_v2 = vld [vmem:[%s1683_s1 + $0x8] sm:$0xff] (!%p222_p3)   ;;  %v1499_v6 = vmov (!%p222_p3), 0   ;;  %vm381_vm0 = vcmask (!%p222_p3), 261120  }
   0x7   : > { %225 = sbr.rel (%p222_p3) target bundleno = 285 (0x11d), region = 32  ;;  %1371 = vmatprep.subr.bf16.mxu1 (!%p222_p3), %v1455_v0  ;;  %1391 = vmatprep.subr.bf16.mxu0 (!%p222_p3), %v1456_v1  ;;  %v1458_v3 = vld [vmem:[%s1683_s1 + $0x18] sm:$0xff] (!%p222_p3)   ;;  %v862_v4 = vld [vmem:[%s1684_s2] sm:$0xff] (!%p222_p3)  ;;  %v864_v5 = vld [vmem:[%s1684_s2 + $0x10] sm:$0xff] (!%p222_p3) }
   0x8   : > { %1372 = vmatpush3.bf16.msra.mxu1 (!%p222_p3), %v1455_v0  ;;  %1392 = vmatpush3.bf16.msra.mxu0 (!%p222_p3), %v1456_v1  ;;  %v863_v7 = vld [vmem:[%s1684_s2 + $0x8] sm:$0xff] (!%p222_p3)  ;;  %v865_v8 = vld [vmem:[%s1684_s2 + $0x18] sm:$0xff] (!%p222_p3)  ;;  %v866_v12 = vld [vmem:[%s1684_s2 + $0x20] sm:$0xff] (!%p222_p3) }
   0x9   : > { %1373 = vmatprep.subr.bf16.mxu1 (!%p222_p3), %v1457_v2  ;;  %1393 = vmatprep.subr.bf16.mxu0 (!%p222_p3), %v1458_v3  ;;  %v867_v14 = vld [vmem:[%s1684_s2 + $0x28] sm:$0xff] (!%p222_p3)  ;;  %v868_v17 = vld [vmem:[%s1684_s2 + $0x30] sm:$0xff] (!%p222_p3)  ;;  %v869_v19 = vld [vmem:[%s1684_s2 + $0x38] sm:$0xff] (!%p222_p3) }
   0xa   : > { %1453 = vset.pattern.permute.xlu0 (!%p222_p3), %v1499_v6  ;;  %1454 = vset.pattern.permute.xlu1 (!%p222_p3), %v1499_v6  ;;  %v870_v23 = vld [vmem:[%s1684_s2 + $0x40] sm:$0xff] (!%p222_p3)  ;;  %v871_v25 = vld [vmem:[%s1684_s2 + $0x48] sm:$0xff] (!%p222_p3)  ;;  %v872_v26 = vld [vmem:[%s1684_s2 + $0x50] sm:$0xff] (!%p222_p3) }
   0xb   : > { %880 = vperm.xlu0 (!%p222_p3), %1453, %v862_v4   ;;  %890 = vperm.xlu1 (!%p222_p3), %1454, %v864_v5   ;;  %v873_v30 = vld [vmem:[%s1684_s2 + $0x58] sm:$0xff] (!%p222_p3)  ;;  %v874_v31 = vld [vmem:[%s1684_s2 + $0x60] sm:$0xff] (!%p222_p3)  ;;  %v875_v32 = vld [vmem:[%s1684_s2 + $0x68] sm:$0xff] (!%p222_p3) }
   0xc   : > { %1374 = vmatpush3.bf16.msra.mxu1 (!%p222_p3), %v1457_v2  ;;  %1394 = vmatpush3.bf16.msra.mxu0 (!%p222_p3), %v1458_v3  ;;  %v876_v34 = vld [vmem:[%s1684_s2 + $0x70] sm:$0xff] (!%p222_p3)  ;;  %v877_v36 = vld [vmem:[%s1684_s2 + $0x78] sm:$0xff] (!%p222_p3) }
   0xe   : > { %s1693_s18 = smov (!%p270_p4, %s1489_s18), 1 }
   0xf   : > { %s1427_s30 = smul.u32 72, %s1693_s18  ;;  %885 = vperm.xlu0 %1453, %v863_v7   ;;  %895 = vperm.xlu1 %1454, %v865_v8   ;;  %s302_s8 = scalar_lea.vmem %s1687_s5, %s1693_s18 }
  0x11   : > { %s1572_s12 = scalar_lea.vmem %s1682_s0, %s1427_s30  ;;  %s296_s30 = scalar_lea.vmem %s1686_s4, %s1693_s18 }
  0x12   : > { %v1459_v9 = vld [vmem:[%s1572_s12] sm:$0xff]   ;;  %v1460_v10 = vld [vmem:[%s1572_s12 + $0x8] sm:$0xff]   ;;  %v1462_v13 = vld [vmem:[%s1572_s12 + $0x10] sm:$0xff]  }
  0x13   : > { %1375 = vmatprep.mubr.msk.bf16.mxu1 %vm381_vm0, %v1459_v9  ;;  %v1461_v11 = vld [vmem:[%s1572_s12 + $0x8] sm:$0xff]   ;;  %1395 = vmatprep.mubr.msk.bf16.mxu0 %vm381_vm0, %v1460_v10  ;;  %v1463_v15 = vld [vmem:[%s1572_s12 + $0x10] sm:$0xff]   ;;  %v1464_v16 = vld [vmem:[%s1572_s12 + $0x18] sm:$0xff]  }
  0x14   : > { %1376 = vmatmul.mubr.msk.bf16.vlgmr.msra.gmra.mrb[0].mxu1 %vm381_vm0, %v1461_v11  ;;  %1396 = vmatmul.mubr.msk.bf16.vlgmr.msra.gmra.mrb[0].mxu0 %vm381_vm0, %v1462_v13  ;;  %v1465_v18 = vld [vmem:[%s1572_s12 + $0x18] sm:$0xff]   ;;  %v1466_v20 = vld [vmem:[%s1572_s12 + $0x20] sm:$0xff]   ;;  %v1468_v22 = vld [vmem:[%s1572_s12 + $0x28] sm:$0xff]  }
  0x15   : > { %1379 = vmatprep.mubr.msk.bf16.mxu1 %vm381_vm0, %v1463_v15  ;;  %1399 = vmatprep.mubr.msk.bf16.mxu0 %vm381_vm0, %v1464_v16  ;;  %v1467_v21 = vld [vmem:[%s1572_s12 + $0x20] sm:$0xff]   ;;  %v1469_v24 = vld [vmem:[%s1572_s12 + $0x28] sm:$0xff]   ;;  %v1470_v27 = vld [vmem:[%s1572_s12 + $0x30] sm:$0xff]  }
  0x16   : > { %900 = vperm.xlu0 %1453, %v866_v12   ;;  %905 = vperm.xlu1 %1454, %v867_v14   ;;  %v1471_v28 = vld [vmem:[%s1572_s12 + $0x30] sm:$0xff]   ;;  %v1472_v29 = vld [vmem:[%s1572_s12 + $0x38] sm:$0xff]   ;;  %v1474_v35 = vld [vmem:[%s1572_s12 + $0x40] sm:$0xff]  }
  0x17   : > { %v1473_v33 = vld [vmem:[%s1572_s12 + $0x38] sm:$0xff]   ;;  %s1287_s12 = sshll.u32 %s1693_s18, 6 }
  0x18   : > { %s1652_s27 = scalar_lea.vmem %s1685_s3, %s1287_s12 }
  0x1a   : > { %910 = vperm.xlu0 %1453, %v868_v17   ;;  %915 = vperm.xlu1 %1454, %v869_v19  }
  0x1c   : > { %1380 = vmatmul.mubr.msk.bf16.gmra.mrb[4].mxu1 %vm381_vm0, %v1465_v18  ;;  %1400 = vmatmul.mubr.msk.bf16.gmra.mrb[4].mxu0 %vm381_vm0, %v1466_v20 }
  0x1d   : > { %1383 = vmatprep.mubr.msk.bf16.mxu1 %vm381_vm0, %v1467_v21  ;;  %1403 = vmatprep.mubr.msk.bf16.mxu0 %vm381_vm0, %v1468_v22 }
  0x1e   : > { %920 = vperm.xlu0 %1453, %v870_v23   ;;  %925 = vperm.xlu1 %1454, %v871_v25  }
  0x22   : > { %930 = vperm.xlu0 %1453, %v872_v26   ;;  %935 = vperm.xlu1 %1454, %v873_v30  }
  0x24   : > { %1384 = vmatmul.mubr.msk.bf16.gmra.mrb[8].mxu1 %vm381_vm0, %v1469_v24  ;;  %1404 = vmatmul.mubr.msk.bf16.gmra.mrb[8].mxu0 %vm381_vm0, %v1470_v27 }
  0x25   : > { %1387 = vmatprep.mubr.msk.bf16.mxu1 %vm381_vm0, %v1471_v28  ;;  %1407 = vmatprep.mubr.msk.bf16.mxu0 %vm381_vm0, %v1472_v29 }
  0x26   : > { %940 = vperm.xlu0 %1453, %v874_v31   ;;  %945 = vperm.xlu1 %1454, %v875_v32  }
  0x2a   : > { %950 = vperm.xlu0 %1453, %v876_v34   ;;  %955 = vperm.xlu1 %1454, %v877_v36  }
  0x2c   : > { %1388 = vmatmul.mubr.msk.bf16.gmra.mrb[12].mxu1 %vm381_vm0, %v1473_v33  ;;  %1408 = vmatmul.mubr.msk.bf16.gmra.mrb[12].mxu0 %vm381_vm0, %v1474_v35 }
  0x8a   : > { %v881_v37 = vpop.permute.xlu0 %880  ;;  %v891_v38 = vpop.permute.xlu1 %890 }
  0x8e   : > { %v886_v39 = vpop.permute.xlu0 %885  ;;  %v896_v40 = vpop.permute.xlu1 %895 }
  0x95   : > { %v901_v41 = vpop.permute.xlu0 %900  ;;  %v906_v42 = vpop.permute.xlu1 %905 }
  0x99   : > { %v911_v43 = vpop.permute.xlu0 %910  ;;  %v916_v44 = vpop.permute.xlu1 %915 }
  0x9d   : > { %v921_v59 = vpop.permute.xlu0 %920  ;;  %v1654_v63 = vpop.permute.xlu1 %925 }
  0xa1   : > { %v931_v24 = vpop.permute.xlu0 %930  ;;  %v936_v29 = vpop.permute.xlu1 %935 }
  0xe7   : > { %v1377_v45 = vpop.f32.mrb[0].mxu1  ;;  %v1397_v46 = vpop.f32.mrb[0].mxu0 }
  0xe8   : > { %v440_v47 = vpop.f32.mrb[1].mxu1  ;;  %v736_v48 = vadd.f32 %v1397_v46, %v1377_v45  ;;  %v655_v49 = vpop.f32.mrb[1].mxu0 }
  0xe9   : > { %v1378_v50 = vpop.f32.mrb[2].mxu1  ;;  %v734_v51 = vadd.f32 %v655_v49, %v440_v47  ;;  %v1398_v52 = vpop.f32.mrb[2].mxu0 }
  0xea   : > { %v443_v53 = vpop.f32.mrb[3].mxu1  ;;  %v737_v54 = vadd.f32 %v1398_v52, %v1378_v50  ;;  %v658_v55 = vpop.f32.mrb[3].mxu0  ;;  %v960_v60 = vmul.f32 %v891_v38, %v736_v48 }
  0xeb   : > { %v958_v56 = vmul.f32 %v881_v37, %v734_v51  ;;  %v735_v57 = vadd.f32 %v658_v55, %v443_v53 }
  0xec   : > { %v1312_v58 = vpack.c.bf16 %v737_v54, %v736_v48  ;;  %v961_v0 = vmul.f32 %v896_v40, %v737_v54  ;;  %v998_v10 = vmul.f32 %v960_v60, %v736_v48 }
  0xed   : > { %v1307_v61 = vpack.c.bf16 %v735_v57, %v734_v51  ;;  %v959_v62 = vmul.f32 %v886_v39, %v735_v57  ;;  %v996_v2 = vmul.f32 %v958_v56, %v734_v51 }
  0xee   : > { %1344 = vst [vmem:[%s1652_s27 + $0x8] sm:$0xff] %v1312_v58   ;;  %v999_v16 = vmul.f32 %v961_v0, %v737_v54 }
  0xef   : > { %v1381_v1 = vpop.f32.mrb[4].mxu1  ;;  %1308 = vst [vmem:[%s1652_s27] sm:$0xff] %v1307_v61   ;;  %v974_v3 = vadd.f32 %v959_v62, %v958_v56  ;;  %v997_v4 = vmul.f32 %v959_v62, %v735_v57  ;;  %v1401_v5 = vpop.f32.mrb[4].mxu0 }
  0xf0   : > { %v456_v6 = vpop.f32.mrb[5].mxu1  ;;  %v740_v7 = vadd.f32 %v1401_v5, %v1381_v1  ;;  %v671_v8 = vpop.f32.mrb[5].mxu0 }
  0xf1   : > { %v1382_v9 = vpop.f32.mrb[6].mxu1  ;;  %v975_v11 = vadd.f32 %v974_v3, %v960_v60  ;;  %v1012_v12 = vadd.f32 %v997_v4, %v996_v2  ;;  %v738_v13 = vadd.f32 %v671_v8, %v456_v6  ;;  %v1402_v14 = vpop.f32.mrb[6].mxu0 }
  0xf2   : > { %v459_v15 = vpop.f32.mrb[7].mxu1  ;;  %v741_v17 = vadd.f32 %v1402_v14, %v1382_v9  ;;  %v674_v18 = vpop.f32.mrb[7].mxu0  ;;  %v964_v30 = vmul.f32 %v911_v43, %v740_v7 }
  0xf3   : > { %v1013_v19 = vadd.f32 %v1012_v12, %v998_v10  ;;  %v962_v20 = vmul.f32 %v901_v41, %v738_v13  ;;  %v976_v21 = vadd.f32 %v975_v11, %v961_v0  ;;  %v739_v22 = vadd.f32 %v674_v18, %v459_v15  ;;  %v941_v56 = vpop.permute.xlu0 %940  ;;  %v946_v61 = vpop.permute.xlu1 %945 }
  0xf4   : > { %v1322_v23 = vpack.c.bf16 %v741_v17, %v740_v7  ;;  %v965_v36 = vmul.f32 %v916_v44, %v741_v17  ;;  %v1002_v48 = vmul.f32 %v964_v30, %v740_v7 }
  0xf5   : > { %v977_v25 = vadd.f32 %v976_v21, %v962_v20  ;;  %v1000_v26 = vmul.f32 %v962_v20, %v738_v13  ;;  %v1014_v27 = vadd.f32 %v1013_v19, %v999_v16  ;;  %v1317_v28 = vpack.c.bf16 %v739_v22, %v738_v13 }
  0xf6   : > { %1346 = vst [vmem:[%s1652_s27 + $0x18] sm:$0xff] %v1322_v23   ;;  %v963_v31 = vmul.f32 %v906_v42, %v739_v22  ;;  %v1003_v53 = vmul.f32 %v965_v36, %v741_v17 }
  0xf7   : > { %v1385_v32 = vpop.f32.mrb[8].mxu1  ;;  %v1015_v33 = vadd.f32 %v1014_v27, %v1000_v26  ;;  %1345 = vst [vmem:[%s1652_s27 + $0x10] sm:$0xff] %v1317_v28   ;;  %v1405_v34 = vpop.f32.mrb[8].mxu0 }
  0xf8   : > { %v472_v35 = vpop.f32.mrb[9].mxu1  ;;  %v978_v37 = vadd.f32 %v977_v25, %v963_v31  ;;  %v1001_v38 = vmul.f32 %v963_v31, %v739_v22  ;;  %v744_v39 = vadd.f32 %v1405_v34, %v1385_v32  ;;  %v687_v40 = vpop.f32.mrb[9].mxu0 }
  0xf9   : > { %v1386_v41 = vpop.f32.mrb[10].mxu1  ;;  %v742_v45 = vadd.f32 %v687_v40, %v472_v35  ;;  %v1406_v46 = vpop.f32.mrb[10].mxu0 }
  0xfa   : > { %v475_v47 = vpop.f32.mrb[11].mxu1  ;;  %v979_v49 = vadd.f32 %v978_v37, %v964_v30  ;;  %v1016_v50 = vadd.f32 %v1015_v33, %v1001_v38  ;;  %v745_v43 = vadd.f32 %v1406_v46, %v1386_v41  ;;  %v690_v42 = vpop.f32.mrb[11].mxu0  ;;  %v968_v62 = vmul.f32 %v931_v24, %v744_v39 }
  0xfb   : > { %v966_v51 = vmul.f32 %v921_v59, %v742_v45  ;;  %v743_v52 = vadd.f32 %v690_v42, %v475_v47  ;;  %v951_v24 = vpop.permute.xlu0 %950  ;;  %v956_v31 = vpop.permute.xlu1 %955 }
  0xfc   : > { %v1017_v54 = vadd.f32 %v1016_v50, %v1002_v48  ;;  %v980_v44 = vadd.f32 %v979_v49, %v965_v36  ;;  %v1332_v55 = vpack.c.bf16 %v745_v43, %v744_v39  ;;  %v969_v6 = vmul.f32 %v936_v29, %v745_v43 }
  0xfd   : > { %v1004_v57 = vmul.f32 %v966_v51, %v742_v45  ;;  %v1327_v58 = vpack.c.bf16 %v743_v52, %v742_v45  ;;  %v967_v60 = vmul.f32 %v1654_v63, %v743_v52  ;;  %v1006_v63 = vmul.f32 %v968_v62, %v744_v39 }
  0xfe   : > { %v981_v0 = vadd.f32 %v980_v44, %v966_v51  ;;  %v1018_v1 = vadd.f32 %v1017_v54, %v1003_v53  ;;  %1348 = vst [vmem:[%s1652_s27 + $0x28] sm:$0xff] %v1332_v55   ;;  %v1007_v20 = vmul.f32 %v969_v6, %v745_v43 }
  0xff   : > { %v1389_v2 = vpop.f32.mrb[12].mxu1  ;;  %1347 = vst [vmem:[%s1652_s27 + $0x20] sm:$0xff] %v1327_v58   ;;  %v1005_v3 = vmul.f32 %v967_v60, %v743_v52  ;;  %v1409_v59 = vpop.f32.mrb[12].mxu0 }
 0x100   : > { %v488_v4 = vpop.f32.mrb[13].mxu1  ;;  %v1019_v5 = vadd.f32 %v1018_v1, %v1004_v57  ;;  %v982_v7 = vadd.f32 %v981_v0, %v967_v60  ;;  %v748_v8 = vadd.f32 %v1409_v59, %v1389_v2  ;;  %v703_v9 = vpop.f32.mrb[13].mxu0 }
 0x101   : > { %v1390_v10 = vpop.f32.mrb[14].mxu1  ;;  %v746_v11 = vadd.f32 %v703_v9, %v488_v4  ;;  %v1410_v12 = vpop.f32.mrb[14].mxu0 }
 0x102   : > { %v491_v13 = vpop.f32.mrb[15].mxu1  ;;  %v983_v14 = vadd.f32 %v982_v7, %v968_v62  ;;  %v1020_v15 = vadd.f32 %v1019_v5, %v1005_v3  ;;  %v749_v16 = vadd.f32 %v1410_v12, %v1390_v10  ;;  %v706_v17 = vpop.f32.mrb[15].mxu0  ;;  %v972_v28 = vmul.f32 %v951_v24, %v748_v8 }
 0x103   : > { %v970_v18 = vmul.f32 %v941_v56, %v746_v11  ;;  %v747_v19 = vadd.f32 %v706_v17, %v491_v13 }
 0x104   : > { %v1021_v21 = vadd.f32 %v1020_v15, %v1006_v63  ;;  %v984_v22 = vadd.f32 %v983_v14, %v969_v6  ;;  %v1342_v23 = vpack.c.bf16 %v749_v16, %v748_v8  ;;  %v973_v34 = vmul.f32 %v956_v31, %v749_v16 }
 0x105   : > { %v1008_v25 = vmul.f32 %v970_v18, %v746_v11  ;;  %v1337_v26 = vpack.c.bf16 %v747_v19, %v746_v11  ;;  %v971_v27 = vmul.f32 %v946_v61, %v747_v19  ;;  %v1010_v36 = vmul.f32 %v972_v28, %v748_v8 }
 0x106   : > { %v985_v29 = vadd.f32 %v984_v22, %v970_v18  ;;  %v1022_v30 = vadd.f32 %v1021_v21, %v1007_v20  ;;  %1350 = vst [vmem:[%s1652_s27 + $0x38] sm:$0xff] %v1342_v23   ;;  %v1011_v39 = vmul.f32 %v973_v34, %v749_v16 }
 0x107   : > { %1349 = vst [vmem:[%s1652_s27 + $0x30] sm:$0xff] %v1337_v26   ;;  %v1009_v32 = vmul.f32 %v971_v27, %v747_v19 }
 0x108   : > { %v1023_v33 = vadd.f32 %v1022_v30, %v1008_v25  ;;  %v986_v35 = vadd.f32 %v985_v29, %v971_v27 }
 0x10a   : > { %v987_v37 = vadd.f32 %v986_v35, %v972_v28  ;;  %v1024_v38 = vadd.f32 %v1023_v33, %v1009_v32 }
 0x10c   : > { %v988_v40 = vadd.f32 %v987_v37, %v973_v34  ;;  %v1025_v41 = vadd.f32 %v1024_v38, %v1010_v36 }
 0x10e   : > { %v989_v45 = vrot.slane %v988_v40, 4  ;;  %v1026_v46 = vadd.f32 %v1025_v41, %v1011_v39 }
 0x110   : > { %v990_v47 = vadd.f32 %v989_v45, %v988_v40  ;;  %v1027_v48 = vrot.slane %v1026_v46, 4 }
 0x112   : > { %v991_v49 = vrot.slane %v990_v47, 2  ;;  %v1028_v50 = vadd.f32 %v1027_v48, %v1026_v46 }
 0x114   : > { %v992_v43 = vadd.f32 %v991_v49, %v990_v47  ;;  %v1029_v42 = vrot.slane %v1028_v50, 2 }
 0x116   : > { %v993_v51 = vrot.slane %v992_v43, 1  ;;  %v1030_v52 = vadd.f32 %v1029_v42, %v1028_v50 }
 0x118   : > { %v994_v53 = vadd.f32 %v993_v51, %v992_v43  ;;  %v1031_v54 = vrot.slane %v1030_v52, 1 }
 0x11a   : > { %995 = vst [vmem:[%s296_s30] sm:$0x1] %v994_v53  ;;  %v1032_v44 = vadd.f32 %v1031_v54, %v1030_v52 }
 0x11c   : > { %1033 = vst [vmem:[%s302_s8] sm:$0x1] %v1032_v44 }
 0x11d PF: > { %s16_s20 = sadd.s32 1, %s1497_s20   ;;  %s1688_s18 = smov %s1493_s19 }
 0x11e   : > { %p13_p5 = scmp.ge.s32.totalorder %s16_s20, 4   ;;  %s1689_s19 = smov %s1691_s21 }
 0x120   :  { %15 = sbr.rel (!%p13_p5) target bundleno = 2 (0x2), region = 92 }

// kernel: basic_block_forward.7
= control target key start
LH: loop header
LB: loop body
LE: loop exit
PB: predicated region body
PF: predicated region fallthrough
CT: control target
= control target key end

     0   :  { %s1877_s18 = smov 0   ;;  %s1879_s19 = smov 0   ;;  %s2055_s0 = inlined_call_operand.vmem [shape: bf16[2,160,24], index: 0, kind: input, shape index: {}]   ;;  %s2056_s1 = inlined_call_operand.vmem [shape: bf16[3,24,128], index: 1, kind: input, shape index: {}]   ;;  %s2057_s2 = inlined_call_operand.vmem [shape: f32[128,1], index: 2, kind: input, shape index: {}]   ;;  %s2058_s3 = inlined_call_operand.vmem [shape: bf16[2,128,128], index: 3, kind: output, shape index: {0}]   ;;  %s2059_s4 = inlined_call_operand.vmem [shape: f32[2,1,1,128], index: 4, kind: output, shape index: {1}]   ;;  %s2060_s5 = inlined_call_operand.vmem [shape: f32[2,1,1,128], index: 5, kind: output, shape index: {2}]  }
   0x1   :  { %s1881_s20 = smov 0  }
   0x2 LB: > { %s28_s21 = sadd.s32 1, %s1840_s19  ;;  %p1456_p0 = scmp.ge.s32.totalorder %s1844_s20, 1  ;;  %s1844_s20 = sphi %s1881_s20, %s16_s20   ;;  %s1840_s19 = sphi %s1879_s19, %s2062_s19   ;;  %s1836_s18 = sphi %s1877_s18, %s2061_s18  }
   0x3   : > { %p30_p1 = scmp.ge.s32.totalorder %s28_s21, 2  ;;  %p221_p2 = scmp.lt.s32.totalorder %s1844_s20, 3 }
   0x5   : > { %s2064_s21 = smov (%p30_p1, %s28_s21), 0  ;;  %p222_p3 = pnand %p1456_p0, %p221_p2 }
   0x6   : > { %v1792_v0 = vld [vmem:[%s2056_s1] sm:$0xff] (!%p222_p3)   ;;  %vm402_vm0 = vcmask (!%p222_p3), 1043456   ;;  %v1793_v1 = vld [vmem:[%s2056_s1 + $0xc] sm:$0xff] (!%p222_p3)   ;;  %p270_p4 = scmp.lt.s32.totalorder (!%p222_p3), %s1836_s18, 1  ;;  %v1794_v2 = vld [vmem:[%s2056_s1 + $0x8] ss:$0 sps:$4 sm:$0xff] (!%p222_p3)  }
   0x7   : > { %225 = sbr.rel (%p222_p3) target bundleno = 301 (0x12d), region = 32  ;;  %1664 = vmatprep.subr.bf16.mxu1 (!%p222_p3), %v1792_v0  ;;  %1684 = vmatprep.subr.bf16.mxu0 (!%p222_p3), %v1793_v1  ;;  %v1795_v3 = vld [vmem:[%s2056_s1 + $0x14] ss:$0 sps:$4 sm:$0xff] (!%p222_p3)   ;;  %v404_v4 = vsel (!%p222_p3), %vm402_vm0, %v1794_v2, 0  ;;  %v1800_v6 = vld [vmem:[%s2056_s1 + $0x18] sm:$0xff] (!%p222_p3)   ;;  %v1107_v7 = vld [vmem:[%s2057_s2] sm:$0xff] (!%p222_p3) }
   0x8   : > { %1665 = vmatpush3.bf16.msra.mxu1 (!%p222_p3), %v1792_v0  ;;  %1685 = vmatpush3.bf16.msra.mxu0 (!%p222_p3), %v1793_v1  ;;  %v618_v5 = vsel (!%p222_p3), %vm402_vm0, %v1795_v3, 0  ;;  %v1846_v8 = vmov (!%p222_p3), 0   ;;  %v1109_v9 = vld [vmem:[%s2057_s2 + $0x10] sm:$0xff] (!%p222_p3)  ;;  %vm377_vm1 = vcmask (!%p222_p3), 195584   ;;  %v1108_v10 = vld [vmem:[%s2057_s2 + $0x8] sm:$0xff] (!%p222_p3)  ;;  %v1110_v16 = vld [vmem:[%s2057_s2 + $0x18] sm:$0xff] (!%p222_p3) }
   0x9   : > { %1760 = vmatprep.subr.msk.bf16.mxu1 (!%p222_p3), %vm402_vm0, %v1794_v2  ;;  %1761 = vmatprep.subr.msk.bf16.mxu0 (!%p222_p3), %vm402_vm0, %v1795_v3  ;;  %v1805_v13 = vld [vmem:[%s2056_s1 + $0x20] ss:$0 sps:$4 sm:$0xff] (!%p222_p3)   ;;  %v1112_v22 = vld [vmem:[%s2057_s2 + $0x28] sm:$0xff] (!%p222_p3)  ;;  %v1113_v26 = vld [vmem:[%s2057_s2 + $0x30] sm:$0xff] (!%p222_p3) }
   0xa   : > { %1790 = vset.pattern.permute.xlu0 (!%p222_p3), %v1846_v8  ;;  %1791 = vset.pattern.permute.xlu1 (!%p222_p3), %v1846_v8  ;;  %v1111_v19 = vld [vmem:[%s2057_s2 + $0x20] sm:$0xff] (!%p222_p3)  ;;  %v864_v21 = vsel (!%p222_p3), %vm402_vm0, %v1805_v13, 0  ;;  %v1114_v32 = vld [vmem:[%s2057_s2 + $0x38] sm:$0xff] (!%p222_p3)  ;;  %v1116_v37 = vld [vmem:[%s2057_s2 + $0x48] sm:$0xff] (!%p222_p3) }
   0xb   : > { %1125 = vperm.xlu0 (!%p222_p3), %1790, %v1107_v7   ;;  %1135 = vperm.xlu1 (!%p222_p3), %1791, %v1109_v9   ;;  %v1115_v33 = vld [vmem:[%s2057_s2 + $0x40] sm:$0xff] (!%p222_p3)  ;;  %v1117_v38 = vld [vmem:[%s2057_s2 + $0x50] sm:$0xff] (!%p222_p3)  ;;  %v1118_v39 = vld [vmem:[%s2057_s2 + $0x58] sm:$0xff] (!%p222_p3) }
   0xc   : > { %1667 = vmatpush3.bf16.msra.mxu1 (!%p222_p3), %v404_v4  ;;  %1687 = vmatpush3.bf16.msra.mxu0 (!%p222_p3), %v618_v5  ;;  %v1119_v41 = vld [vmem:[%s2057_s2 + $0x60] sm:$0xff] (!%p222_p3)  ;;  %v1120_v45 = vld [vmem:[%s2057_s2 + $0x68] sm:$0xff] (!%p222_p3)  ;;  %v1121_v46 = vld [vmem:[%s2057_s2 + $0x70] sm:$0xff] (!%p222_p3) }
   0xd   : > { %1724 = vmatprep.subr.bf16.mxu1 (!%p222_p3), %v1793_v1  ;;  %1704 = vmatprep.subr.bf16.mxu0 (!%p222_p3), %v1800_v6  ;;  %v1122_v47 = vld [vmem:[%s2057_s2 + $0x78] sm:$0xff] (!%p222_p3) }
   0xe   : > { %s2066_s18 = smov (!%p270_p4, %s1836_s18), 1 }
   0xf   : > { %s1764_s30 = smul.u32 80, %s2066_s18  ;;  %1130 = vperm.xlu0 %1790, %v1108_v10   ;;  %1140 = vperm.xlu1 %1791, %v1110_v16   ;;  %s296_s9 = scalar_lea.vmem %s2059_s4, %s2066_s18 }
  0x10   : > { %s302_s12 = scalar_lea.vmem %s2060_s5, %s2066_s18 }
  0x11   : > { %s1926_s14 = scalar_lea.vmem %s2055_s0, %s1764_s30 }
  0x12   : > { %v1796_v11 = vld [vmem:[%s1926_s14] sm:$0xff]   ;;  %v1797_v12 = vld [vmem:[%s1926_s14 + $0x8] sm:$0xff]   ;;  %v1799_v15 = vld [vmem:[%s1926_s14 + $0x10] sm:$0xff]  }
  0x13   : > { %1668 = vmatprep.mubr.msk.bf16.mxu1 %vm377_vm1, %v1796_v11  ;;  %v1798_v14 = vld [vmem:[%s1926_s14 + $0x8] sm:$0xff]   ;;  %1688 = vmatprep.mubr.msk.bf16.mxu0 %vm377_vm1, %v1797_v12  ;;  %v1801_v17 = vld [vmem:[%s1926_s14 + $0x10] sm:$0xff]   ;;  %v1802_v18 = vld [vmem:[%s1926_s14 + $0x18] sm:$0xff]  }
  0x14   : > { %1669 = vmatmul.mubr.msk.bf16.vlgmr.msra.gmra.mrb[0].mxu1 %vm377_vm1, %v1798_v14  ;;  %1689 = vmatmul.mubr.msk.bf16.vlgmr.msra.gmra.mrb[0].mxu0 %vm377_vm1, %v1799_v15  ;;  %v1803_v20 = vld [vmem:[%s1926_s14 + $0x18] sm:$0xff]   ;;  %v1804_v23 = vld [vmem:[%s1926_s14 + $0x20] sm:$0xff]   ;;  %v1807_v25 = vld [vmem:[%s1926_s14 + $0x10] sm:$0xff]  }
  0x15   : > { %1726 = vmatpush3.bf16.msra.mxu1 %v1793_v1  ;;  %1705 = vmatpush3.bf16.msra.mxu0 %v1800_v6  ;;  %v1806_v24 = vld [vmem:[%s1926_s14 + $0x20] sm:$0xff]   ;;  %v1808_v27 = vld [vmem:[%s1926_s14 + $0x28] sm:$0xff]   ;;  %v1809_v28 = vld [vmem:[%s1926_s14 + $0x18] sm:$0xff]  }
  0x16   : > { %1672 = vmatprep.mubr.msk.bf16.mxu1 %vm377_vm1, %v1801_v17  ;;  %1692 = vmatprep.mubr.msk.bf16.mxu0 %vm377_vm1, %v1802_v18  ;;  %v1810_v29 = vld [vmem:[%s1926_s14 + $0x30] sm:$0xff]   ;;  %v1811_v30 = vld [vmem:[%s1926_s14 + $0x20] sm:$0xff]   ;;  %v1812_v31 = vld [vmem:[%s1926_s14 + $0x38] sm:$0xff]  }
  0x17   : > { %1763 = vmatprep.subr.msk.bf16.mxu0 %vm402_vm0, %v1805_v13  ;;  %1762 = vmatprep.subr.msk.bf16.mxu1 %vm402_vm0, %v1795_v3  ;;  %v1813_v34 = vld [vmem:[%s1926_s14 + $0x28] sm:$0xff]   ;;  %v1815_v36 = vld [vmem:[%s1926_s14 + $0x30] sm:$0xff]   ;;  %v1817_v42 = vld [vmem:[%s1926_s14 + $0x38] sm:$0xff]  }
  0x18   : > { %1145 = vperm.xlu0 %1790, %v1111_v19   ;;  %1150 = vperm.xlu1 %1791, %v1112_v22   ;;  %v1814_v35 = vld [vmem:[%s1926_s14 + $0x28] sm:$0xff]   ;;  %v1816_v40 = vld [vmem:[%s1926_s14 + $0x30] sm:$0xff]   ;;  %v1818_v43 = vld [vmem:[%s1926_s14 + $0x38] sm:$0xff]  }
  0x19   : > { %1727 = vmatpush3.bf16.msra.mxu1 %v618_v5  ;;  %1707 = vmatpush3.bf16.msra.mxu0 %v864_v21  ;;  %v1819_v44 = vld [vmem:[%s1926_s14 + $0x40] sm:$0xff]   ;;  %v1821_v49 = vld [vmem:[%s1926_s14 + $0x48] sm:$0xff]  }
  0x1a   : > { %v1820_v48 = vld [vmem:[%s1926_s14 + $0x40] sm:$0xff]   ;;  %s1570_s14 = sshll.u32 %s2066_s18, 6 }
  0x1b   : > { %s2028_s6 = scalar_lea.vmem %s2058_s3, %s1570_s14 }
  0x1c   : > { %1673 = vmatmul.mubr.msk.bf16.gmra.mrb[4].mxu1 %vm377_vm1, %v1803_v20  ;;  %1693 = vmatmul.mubr.msk.bf16.gmra.mrb[4].mxu0 %vm377_vm1, %v1804_v23 }
  0x1d   : > { %1676 = vmatprep.mubr.msk.bf16.mxu1 %vm377_vm1, %v1806_v24  ;;  %1708 = vmatprep.mubr.msk.bf16.mxu0 %vm377_vm1, %v1807_v25 }
  0x1e   : > { %1155 = vperm.xlu0 %1790, %v1113_v26   ;;  %1160 = vperm.xlu1 %1791, %v1114_v32  }
  0x22   : > { %1165 = vperm.xlu0 %1790, %v1115_v33   ;;  %1170 = vperm.xlu1 %1791, %v1116_v37  }
  0x24   : > { %1677 = vmatmul.mubr.msk.bf16.gmra.mrb[8].mxu1 %vm377_vm1, %v1808_v27  ;;  %1709 = vmatmul.mubr.msk.bf16.vlgmr.msra.gmra.mrb[0].mxu0 %vm377_vm1, %v1809_v28 }
  0x25   : > { %1680 = vmatprep.mubr.msk.bf16.mxu1 %vm377_vm1, %v1810_v29  ;;  %1712 = vmatprep.mubr.msk.bf16.mxu0 %vm377_vm1, %v1811_v30 }
  0x26   : > { %1175 = vperm.xlu0 %1790, %v1117_v38   ;;  %1180 = vperm.xlu1 %1791, %v1118_v39  }
  0x2a   : > { %1185 = vperm.xlu0 %1790, %v1119_v41   ;;  %1190 = vperm.xlu1 %1791, %v1120_v45  }
  0x2c   : > { %1681 = vmatmul.mubr.msk.bf16.gmra.mrb[12].mxu1 %vm377_vm1, %v1812_v31  ;;  %1713 = vmatmul.mubr.msk.bf16.gmra.mrb[4].mxu0 %vm377_vm1, %v1813_v34 }
  0x2d   : > { %1696 = vmatprep.mubr.msk.bf16.mxu1 %vm377_vm1, %v1814_v35  ;;  %1716 = vmatprep.mubr.msk.bf16.mxu0 %vm377_vm1, %v1815_v36 }
  0x2e   : > { %1195 = vperm.xlu0 %1790, %v1121_v46   ;;  %1200 = vperm.xlu1 %1791, %v1122_v47  }
  0x34   : > { %1697 = vmatmul.mubr.msk.bf16.vlgmr.msra.gmra.mrb[8].mxu1 %vm377_vm1, %v1816_v40  ;;  %1717 = vmatmul.mubr.msk.bf16.gmra.mrb[8].mxu0 %vm377_vm1, %v1817_v42 }
  0x35   : > { %1700 = vmatprep.mubr.msk.bf16.mxu1 %vm377_vm1, %v1818_v43  ;;  %1720 = vmatprep.mubr.msk.bf16.mxu0 %vm377_vm1, %v1819_v44 }
  0x3c   : > { %1701 = vmatmul.mubr.msk.bf16.gmra.mrb[12].mxu1 %vm377_vm1, %v1820_v48  ;;  %1721 = vmatmul.mubr.msk.bf16.gmra.mrb[12].mxu0 %vm377_vm1, %v1821_v49 }
  0x8a   : > { %v1126_v51 = vpop.permute.xlu0 %1125  ;;  %v1136_v53 = vpop.permute.xlu1 %1135 }
  0x8e   : > { %v1131_v56 = vpop.permute.xlu0 %1130  ;;  %v1141_v57 = vpop.permute.xlu1 %1140 }
  0x97   : > { %v1146_v62 = vpop.permute.xlu0 %1145  ;;  %v1151_v63 = vpop.permute.xlu1 %1150 }
  0x9d   : > { %v1156_v3 = vpop.permute.xlu0 %1155  ;;  %v1161_v6 = vpop.permute.xlu1 %1160 }
  0xa1   : > { %v1166_v16 = vpop.permute.xlu0 %1165  ;;  %v1171_v21 = vpop.permute.xlu1 %1170 }
  0xa5   : > { %v1176_v37 = vpop.permute.xlu0 %1175  ;;  %v1181_v42 = vpop.permute.xlu1 %1180 }
  0xe7   : > { %v1670_v50 = vpop.f32.mrb[0].mxu1 }
  0xe8   : > { %v440_v52 = vpop.f32.mrb[1].mxu1 }
  0xe9   : > { %v1671_v54 = vpop.f32.mrb[2].mxu1 }
  0xea   : > { %v443_v55 = vpop.f32.mrb[3].mxu1 }
  0xef   : > { %v1674_v58 = vpop.f32.mrb[4].mxu1 }
  0xf0   : > { %v456_v59 = vpop.f32.mrb[5].mxu1 }
  0xf1   : > { %v1675_v60 = vpop.f32.mrb[6].mxu1 }
  0xf2   : > { %v459_v61 = vpop.f32.mrb[7].mxu1 }
  0xf7   : > { %v1710_v0 = vpop.f32.mrb[0].mxu0 }
  0xf8   : > { %v1728_v1 = vadd.f32 %v1710_v0, %v1670_v50  ;;  %v900_v2 = vpop.f32.mrb[1].mxu0 }
  0xf9   : > { %v1729_v4 = vadd.f32 %v900_v2, %v440_v52  ;;  %v1711_v5 = vpop.f32.mrb[2].mxu0 }
  0xfa   : > { %v1730_v7 = vadd.f32 %v1711_v5, %v1671_v54  ;;  %v903_v8 = vpop.f32.mrb[3].mxu0  ;;  %v1205_v12 = vmul.f32 %v1728_v1, %v1136_v53  ;;  %v1186_v5 = vpop.permute.xlu0 %1185 }
  0xfb   : > { %v1203_v9 = vmul.f32 %v1729_v4, %v1126_v51  ;;  %v1731_v10 = vadd.f32 %v903_v8, %v443_v55 }
  0xfc   : > { %v1595_v11 = vpack.c.bf16 %v1730_v7, %v1728_v1  ;;  %v1206_v15 = vmul.f32 %v1730_v7, %v1141_v57  ;;  %v1243_v24 = vmul.f32 %v1728_v1, %v1205_v12 }
  0xfd   : > { %v1590_v13 = vpack.c.bf16 %v1731_v10, %v1729_v4  ;;  %v1204_v14 = vmul.f32 %v1731_v10, %v1131_v56  ;;  %v1241_v17 = vmul.f32 %v1729_v4, %v1203_v9 }
  0xfe   : > { %1627 = vst [vmem:[%s2028_s6 + $0x8] sm:$0xff] %v1595_v11   ;;  %v1244_v29 = vmul.f32 %v1730_v7, %v1206_v15 }
  0xff   : > { %1591 = vst [vmem:[%s2028_s6] sm:$0xff] %v1590_v13   ;;  %v1219_v18 = vadd.f32 %v1204_v14, %v1203_v9  ;;  %v1242_v19 = vmul.f32 %v1731_v10, %v1204_v14  ;;  %v1714_v20 = vpop.f32.mrb[4].mxu0  ;;  %v1191_v9 = vpop.permute.xlu1 %1190 }
 0x100   : > { %v1732_v22 = vadd.f32 %v1714_v20, %v1674_v58  ;;  %v916_v23 = vpop.f32.mrb[5].mxu0 }
 0x101   : > { %v1220_v25 = vadd.f32 %v1219_v18, %v1205_v12  ;;  %v1257_v26 = vadd.f32 %v1242_v19, %v1241_v17  ;;  %v1733_v27 = vadd.f32 %v916_v23, %v456_v59  ;;  %v1715_v28 = vpop.f32.mrb[6].mxu0 }
 0x102   : > { %v1734_v30 = vadd.f32 %v1715_v28, %v1675_v60  ;;  %v919_v31 = vpop.f32.mrb[7].mxu0  ;;  %v1209_v43 = vmul.f32 %v1732_v22, %v1156_v3 }
 0x103   : > { %v1258_v32 = vadd.f32 %v1257_v26, %v1243_v24  ;;  %v1207_v33 = vmul.f32 %v1733_v27, %v1146_v62  ;;  %v1221_v34 = vadd.f32 %v1220_v25, %v1206_v15  ;;  %v1735_v35 = vadd.f32 %v919_v31, %v459_v61 }
 0x104   : > { %v1605_v36 = vpack.c.bf16 %v1734_v30, %v1732_v22  ;;  %v1210_v49 = vmul.f32 %v1734_v30, %v1161_v6  ;;  %v1247_v58 = vmul.f32 %v1732_v22, %v1209_v43 }
 0x105   : > { %v1222_v38 = vadd.f32 %v1221_v34, %v1207_v33  ;;  %v1245_v39 = vmul.f32 %v1733_v27, %v1207_v33  ;;  %v1259_v40 = vadd.f32 %v1258_v32, %v1244_v29  ;;  %v1600_v41 = vpack.c.bf16 %v1735_v35, %v1733_v27 }
 0x106   : > { %1629 = vst [vmem:[%s2028_s6 + $0x18] sm:$0xff] %v1605_v36   ;;  %v1208_v44 = vmul.f32 %v1735_v35, %v1151_v63  ;;  %v1248_v1 = vmul.f32 %v1734_v30, %v1210_v49 }
 0x107   : > { %v1698_v45 = vpop.f32.mrb[8].mxu1  ;;  %v1260_v46 = vadd.f32 %v1259_v40, %v1245_v39  ;;  %1628 = vst [vmem:[%s2028_s6 + $0x10] sm:$0xff] %v1600_v41   ;;  %v1718_v47 = vpop.f32.mrb[8].mxu0 }
 0x108   : > { %v686_v48 = vpop.f32.mrb[9].mxu1  ;;  %v1223_v50 = vadd.f32 %v1222_v38, %v1208_v44  ;;  %v1246_v51 = vmul.f32 %v1735_v35, %v1208_v44  ;;  %v1736_v52 = vadd.f32 %v1718_v47, %v1698_v45  ;;  %v932_v53 = vpop.f32.mrb[9].mxu0 }
 0x109   : > { %v1699_v54 = vpop.f32.mrb[10].mxu1  ;;  %v1737_v55 = vadd.f32 %v932_v53, %v686_v48  ;;  %v1719_v56 = vpop.f32.mrb[10].mxu0 }
 0x10a   : > { %v689_v57 = vpop.f32.mrb[11].mxu1  ;;  %v1224_v59 = vadd.f32 %v1223_v50, %v1209_v43  ;;  %v1261_v60 = vadd.f32 %v1260_v46, %v1246_v51  ;;  %v1738_v61 = vadd.f32 %v1719_v56, %v1699_v54  ;;  %v935_v62 = vpop.f32.mrb[11].mxu0  ;;  %v1213_v10 = vmul.f32 %v1736_v52, %v1176_v37 }
 0x10b   : > { %v1211_v63 = vmul.f32 %v1737_v55, %v1166_v16  ;;  %v1739_v0 = vadd.f32 %v935_v62, %v689_v57  ;;  %v1196_v37 = vpop.permute.xlu0 %1195  ;;  %v1201_v44 = vpop.permute.xlu1 %1200 }
 0x10c   : > { %v1262_v2 = vadd.f32 %v1261_v60, %v1247_v58  ;;  %v1225_v3 = vadd.f32 %v1224_v59, %v1210_v49  ;;  %v1615_v4 = vpack.c.bf16 %v1738_v61, %v1736_v52  ;;  %v1214_v18 = vmul.f32 %v1738_v61, %v1181_v42 }
 0x10d   : > { %v1249_v6 = vmul.f32 %v1737_v55, %v1211_v63  ;;  %v1610_v7 = vpack.c.bf16 %v1739_v0, %v1737_v55  ;;  %v1212_v8 = vmul.f32 %v1739_v0, %v1171_v21  ;;  %v1251_v21 = vmul.f32 %v1736_v52, %v1213_v10 }
 0x10e   : > { %v1226_v11 = vadd.f32 %v1225_v3, %v1211_v63  ;;  %v1263_v12 = vadd.f32 %v1262_v2, %v1248_v1  ;;  %1631 = vst [vmem:[%s2028_s6 + $0x28] sm:$0xff] %v1615_v4   ;;  %v1252_v33 = vmul.f32 %v1738_v61, %v1214_v18 }
 0x10f   : > { %v1702_v13 = vpop.f32.mrb[12].mxu1  ;;  %1630 = vst [vmem:[%s2028_s6 + $0x20] sm:$0xff] %v1610_v7   ;;  %v1250_v14 = vmul.f32 %v1739_v0, %v1212_v8  ;;  %v1722_v15 = vpop.f32.mrb[12].mxu0 }
 0x110   : > { %v702_v16 = vpop.f32.mrb[13].mxu1  ;;  %v1264_v17 = vadd.f32 %v1263_v12, %v1249_v6  ;;  %v1227_v19 = vadd.f32 %v1226_v11, %v1212_v8  ;;  %v1740_v20 = vadd.f32 %v1722_v15, %v1702_v13  ;;  %v948_v22 = vpop.f32.mrb[13].mxu0 }
 0x111   : > { %v1703_v23 = vpop.f32.mrb[14].mxu1  ;;  %v1741_v24 = vadd.f32 %v948_v22, %v702_v16  ;;  %v1723_v25 = vpop.f32.mrb[14].mxu0 }
 0x112   : > { %v705_v26 = vpop.f32.mrb[15].mxu1  ;;  %v1228_v27 = vadd.f32 %v1227_v19, %v1213_v10  ;;  %v1265_v28 = vadd.f32 %v1264_v17, %v1250_v14  ;;  %v1742_v29 = vadd.f32 %v1723_v25, %v1703_v23  ;;  %v951_v30 = vpop.f32.mrb[15].mxu0  ;;  %v1217_v41 = vmul.f32 %v1740_v20, %v1196_v37 }
 0x113   : > { %v1215_v31 = vmul.f32 %v1741_v24, %v1186_v5  ;;  %v1743_v32 = vadd.f32 %v951_v30, %v705_v26 }
 0x114   : > { %v1266_v34 = vadd.f32 %v1265_v28, %v1251_v21  ;;  %v1229_v35 = vadd.f32 %v1228_v27, %v1214_v18  ;;  %v1625_v36 = vpack.c.bf16 %v1742_v29, %v1740_v20  ;;  %v1218_v47 = vmul.f32 %v1742_v29, %v1201_v44 }
 0x115   : > { %v1253_v38 = vmul.f32 %v1741_v24, %v1215_v31  ;;  %v1620_v39 = vpack.c.bf16 %v1743_v32, %v1741_v24  ;;  %v1216_v40 = vmul.f32 %v1743_v32, %v1191_v9  ;;  %v1255_v49 = vmul.f32 %v1740_v20, %v1217_v41 }
 0x116   : > { %v1230_v42 = vadd.f32 %v1229_v35, %v1215_v31  ;;  %v1267_v43 = vadd.f32 %v1266_v34, %v1252_v33  ;;  %1633 = vst [vmem:[%s2028_s6 + $0x38] sm:$0xff] %v1625_v36   ;;  %v1256_v52 = vmul.f32 %v1742_v29, %v1218_v47 }
 0x117   : > { %1632 = vst [vmem:[%s2028_s6 + $0x30] sm:$0xff] %v1620_v39   ;;  %v1254_v45 = vmul.f32 %v1743_v32, %v1216_v40 }
 0x118   : > { %v1268_v46 = vadd.f32 %v1267_v43, %v1253_v38  ;;  %v1231_v48 = vadd.f32 %v1230_v42, %v1216_v40 }
 0x11a   : > { %v1232_v50 = vadd.f32 %v1231_v48, %v1217_v41  ;;  %v1269_v51 = vadd.f32 %v1268_v46, %v1254_v45 }
 0x11c   : > { %v1233_v53 = vadd.f32 %v1232_v50, %v1218_v47  ;;  %v1270_v54 = vadd.f32 %v1269_v51, %v1255_v49 }
 0x11e   : > { %v1234_v55 = vrot.slane %v1233_v53, 4  ;;  %v1271_v56 = vadd.f32 %v1270_v54, %v1256_v52 }
 0x120   : > { %v1235_v57 = vadd.f32 %v1234_v55, %v1233_v53  ;;  %v1272_v58 = vrot.slane %v1271_v56, 4 }
 0x122   : > { %v1236_v59 = vrot.slane %v1235_v57, 2  ;;  %v1273_v60 = vadd.f32 %v1272_v58, %v1271_v56 }
 0x124   : > { %v1237_v61 = vadd.f32 %v1236_v59, %v1235_v57  ;;  %v1274_v62 = vrot.slane %v1273_v60, 2 }
 0x126   : > { %v1238_v63 = vrot.slane %v1237_v61, 1  ;;  %v1275_v0 = vadd.f32 %v1274_v62, %v1273_v60 }
 0x128   : > { %v1239_v1 = vadd.f32 %v1238_v63, %v1237_v61  ;;  %v1276_v2 = vrot.slane %v1275_v0, 1 }
 0x12a   : > { %1240 = vst [vmem:[%s296_s9] sm:$0x1] %v1239_v1  ;;  %v1277_v3 = vadd.f32 %v1276_v2, %v1275_v0 }
 0x12c   : > { %1278 = vst [vmem:[%s302_s12] sm:$0x1] %v1277_v3 }
 0x12d PF: > { %s16_s20 = sadd.s32 1, %s1844_s20   ;;  %s2061_s18 = smov %s1840_s19 }
 0x12e   : > { %p13_p5 = scmp.ge.s32.totalorder %s16_s20, 4   ;;  %s2062_s19 = smov %s2064_s21 }
 0x130   :  { %15 = sbr.rel (!%p13_p5) target bundleno = 2 (0x2), region = 94 }

// kernel: basic_block_forward.9
= control target key start
LH: loop header
LB: loop body
LE: loop exit
PB: predicated region body
PF: predicated region fallthrough
CT: control target
= control target key end

     0   :  { %s817_s21 = smov 0   ;;  %s819_s22 = smov 0   ;;  %s979_s0 = inlined_call_operand.vmem [shape: bf16[2,128,128], index: 0, kind: input, shape index: {}]   ;;  %s980_s1 = inlined_call_operand.vmem [shape: f32[1,128], index: 1, kind: input, shape index: {}]   ;;  %s981_s2 = inlined_call_operand.vmem [shape: f32[1,128], index: 2, kind: input, shape index: {}]   ;;  %s982_s3 = inlined_call_operand.vmem [shape: bf16[2,128,128], index: 3, kind: input, shape index: {}]   ;;  %s983_s4 = inlined_call_operand.vmem [shape: f32[1,128], index: 4, kind: input, shape index: {}]   ;;  %s984_s5 = inlined_call_operand.vmem [shape: f32[1,128], index: 5, kind: input, shape index: {}]   ;;  %s985_s6 = inlined_call_operand.vmem [shape: f32[2,128,128], index: 6, kind: output, shape index: {}]  }
   0x1   :  { %s821_s23 = smov 0  }
   0x2 LB: > { %s28_s24 = sadd.s32 1, %s776_s22  ;;  %p640_p0 = scmp.ge.s32.totalorder %s780_s23, 1  ;;  %s780_s23 = sphi %s821_s23, %s16_s23   ;;  %s776_s22 = sphi %s819_s22, %s987_s22   ;;  %s772_s21 = sphi %s817_s21, %s986_s21  }
   0x3   : > { %p30_p1 = scmp.ge.s32.totalorder %s28_s24, 2  ;;  %p250_p2 = scmp.lt.s32.totalorder %s780_s23, 3 }
   0x5   : > { %s989_s24 = smov (%p30_p1, %s28_s24), 0  ;;  %p251_p3 = pnand %p640_p0, %p250_p2 }
   0x6   : > { %p298_p4 = scmp.lt.s32.totalorder (!%p251_p3), %s772_s21, 1  ;;  %v851_v0 = vld [vmem:[%s980_s1] ss:$0 sm:$0xff] (!%p251_p3) }
   0x7   : > { %254 = sbr.rel (%p251_p3) target bundleno = 56 (0x38), region = 44  ;;  %v856_v1 = vld [vmem:[%s983_s4] ss:$0 sm:$0xff] (!%p251_p3) }
   0x8   : > { %v865_v10 = vld [vmem:[%s981_s2] ss:$0 sm:$0xff] (!%p251_p3) }
   0x9   : > { %v870_v11 = vld [vmem:[%s984_s5] ss:$0 sm:$0xff] (!%p251_p3) }
   0xe   : > { %s991_s21 = smov (!%p298_p4, %s772_s21), 1 }
   0xf   : > { %s653_s25 = sshll.u32 %s991_s21, 6  ;;  %s655_s16 = sshll.u32 %s991_s21, 7 }
  0x10   : > { %s841_s28 = scalar_lea.vmem %s979_s0, %s653_s25  ;;  %s846_s7 = scalar_lea.vmem %s982_s3, %s653_s25 }
  0x11   : > { %v657_v2 = vld [vmem:[%s841_s28] sm:$0xff]   ;;  %v720_v4 = vld [vmem:[%s841_s28 + $0x8] sm:$0xff]   ;;  %v721_v24 = vld [vmem:[%s841_s28 + $0x10] sm:$0xff]   ;;  %s894_s19 = scalar_lea.vmem %s985_s6, %s655_s16 }
  0x12   : > { %v689_v3 = vld [vmem:[%s846_s7] sm:$0xff]   ;;  %v658_v5 = vunpack.c.l.bf16 %v657_v2  ;;  %v659_v7 = vunpack.c.h.bf16 %v657_v2  ;;  %v727_v9 = vld [vmem:[%s846_s7 + $0x8] sm:$0xff]   ;;  %v662_v12 = vunpack.c.l.bf16 %v720_v4  ;;  %v663_v14 = vunpack.c.h.bf16 %v720_v4  ;;  %v728_v25 = vld [vmem:[%s846_s7 + $0x10] sm:$0xff]  }
  0x13   : > { %v690_v6 = vunpack.c.l.bf16 %v689_v3  ;;  %v691_v8 = vunpack.c.h.bf16 %v689_v3  ;;  %v694_v13 = vunpack.c.l.bf16 %v727_v9  ;;  %v695_v15 = vunpack.c.h.bf16 %v727_v9  ;;  %v722_v42 = vld [vmem:[%s841_s28 + $0x18] sm:$0xff]   ;;  %v723_v52 = vld [vmem:[%s841_s28 + $0x20] sm:$0xff]  }
  0x14   : > { %v366_v16 = vmul.f32 %v658_v5, %v851_v0  ;;  %v367_v18 = vmul.f32 %v659_v7, %v851_v0  ;;  %v368_v20 = vmul.f32 %v662_v12, %v851_v0  ;;  %v369_v22 = vmul.f32 %v663_v14, %v851_v0  ;;  %v729_v43 = vld [vmem:[%s846_s7 + $0x18] sm:$0xff]   ;;  %v730_v57 = vld [vmem:[%s846_s7 + $0x20] sm:$0xff]   ;;  %v724_v14 = vld [vmem:[%s841_s28 + $0x28] sm:$0xff]  }
  0x15   : > { %v444_v17 = vmul.f32 %v690_v6, %v856_v1  ;;  %v445_v19 = vmul.f32 %v691_v8, %v856_v1  ;;  %v446_v21 = vmul.f32 %v694_v13, %v856_v1  ;;  %v447_v23 = vmul.f32 %v695_v15, %v856_v1  ;;  %v731_v15 = vld [vmem:[%s846_s7 + $0x28] sm:$0xff]  }
  0x16   : > { %v389_v26 = vadd.f32 %v865_v10, %v366_v16  ;;  %v390_v28 = vadd.f32 %v865_v10, %v367_v18  ;;  %v391_v30 = vadd.f32 %v865_v10, %v368_v20  ;;  %v392_v32 = vadd.f32 %v865_v10, %v369_v22 }
  0x17   : > { %v467_v27 = vadd.f32 %v870_v11, %v444_v17  ;;  %v468_v29 = vadd.f32 %v870_v11, %v445_v19  ;;  %v469_v31 = vadd.f32 %v870_v11, %v446_v21  ;;  %v470_v33 = vadd.f32 %v870_v11, %v447_v23 }
  0x18   : > { %v666_v36 = vunpack.c.l.bf16 %v721_v24  ;;  %v698_v37 = vunpack.c.l.bf16 %v728_v25  ;;  %v667_v40 = vunpack.c.h.bf16 %v721_v24  ;;  %v699_v41 = vunpack.c.h.bf16 %v728_v25 }
  0x19   : > { %v483_v34 = vadd.f32 %v467_v27, %v389_v26  ;;  %v484_v35 = vadd.f32 %v468_v29, %v390_v28  ;;  %v485_v38 = vadd.f32 %v469_v31, %v391_v30  ;;  %v486_v39 = vadd.f32 %v470_v33, %v392_v32  ;;  %v725_v32 = vld [vmem:[%s841_s28 + $0x30] sm:$0xff]  }
  0x1a   : > { %v370_v46 = vmul.f32 %v666_v36, %v851_v0  ;;  %v448_v47 = vmul.f32 %v698_v37, %v856_v1  ;;  %v371_v50 = vmul.f32 %v667_v40, %v851_v0  ;;  %v449_v51 = vmul.f32 %v699_v41, %v856_v1  ;;  %v732_v37 = vld [vmem:[%s846_s7 + $0x30] sm:$0xff]  }
  0x1b   : > { %v499_v44 = vmax.f32 %v483_v34, 0.0  ;;  %v500_v45 = vmax.f32 %v484_v35, 0.0  ;;  %v501_v48 = vmax.f32 %v485_v38, 0.0  ;;  %v502_v49 = vmax.f32 %v486_v39, 0.0 }
  0x1c   : > { %v393_v53 = vadd.f32 %v865_v10, %v370_v46  ;;  %v471_v54 = vadd.f32 %v870_v11, %v448_v47  ;;  %v670_v55 = vunpack.c.l.bf16 %v722_v42  ;;  %v702_v56 = vunpack.c.l.bf16 %v729_v43  ;;  %v726_v46 = vld [vmem:[%s841_s28 + $0x38] sm:$0xff]  }
  0x1d   : > { %515 = vst [vmem:[%s894_s19] sm:$0xff] %v499_v44  ;;  %516 = vst [vmem:[%s894_s19 + $0x8] sm:$0xff] %v500_v45  ;;  %v394_v58 = vadd.f32 %v865_v10, %v371_v50  ;;  %v472_v59 = vadd.f32 %v870_v11, %v449_v51  ;;  %v671_v60 = vunpack.c.h.bf16 %v722_v42  ;;  %v703_v61 = vunpack.c.h.bf16 %v729_v43 }
  0x1e   : > { %517 = vst [vmem:[%s894_s19 + $0x10] sm:$0xff] %v501_v48  ;;  %518 = vst [vmem:[%s894_s19 + $0x18] sm:$0xff] %v502_v49  ;;  %v487_v62 = vadd.f32 %v471_v54, %v393_v53  ;;  %v372_v63 = vmul.f32 %v670_v55, %v851_v0  ;;  %v450_v2 = vmul.f32 %v702_v56, %v856_v1  ;;  %v674_v3 = vunpack.c.l.bf16 %v723_v52  ;;  %v733_v55 = vld [vmem:[%s846_s7 + $0x38] sm:$0xff]  }
  0x1f   : > { %v488_v4 = vadd.f32 %v472_v59, %v394_v58  ;;  %v373_v5 = vmul.f32 %v671_v60, %v851_v0  ;;  %v451_v6 = vmul.f32 %v703_v61, %v856_v1  ;;  %v706_v7 = vunpack.c.l.bf16 %v730_v57 }
  0x20   : > { %v503_v8 = vmax.f32 %v487_v62, 0.0  ;;  %v395_v9 = vadd.f32 %v865_v10, %v372_v63  ;;  %v473_v12 = vadd.f32 %v870_v11, %v450_v2  ;;  %v374_v13 = vmul.f32 %v674_v3, %v851_v0 }
  0x21   : > { %v504_v16 = vmax.f32 %v488_v4, 0.0  ;;  %v396_v17 = vadd.f32 %v865_v10, %v373_v5  ;;  %v474_v18 = vadd.f32 %v870_v11, %v451_v6  ;;  %v452_v19 = vmul.f32 %v706_v7, %v856_v1 }
  0x22   : > { %519 = vst [vmem:[%s894_s19 + $0x20] sm:$0xff] %v503_v8  ;;  %v489_v20 = vadd.f32 %v473_v12, %v395_v9  ;;  %v397_v21 = vadd.f32 %v865_v10, %v374_v13  ;;  %v675_v22 = vunpack.c.h.bf16 %v723_v52  ;;  %v707_v23 = vunpack.c.h.bf16 %v730_v57 }
  0x23   : > { %520 = vst [vmem:[%s894_s19 + $0x28] sm:$0xff] %v504_v16  ;;  %v490_v24 = vadd.f32 %v474_v18, %v396_v17  ;;  %v475_v25 = vadd.f32 %v870_v11, %v452_v19  ;;  %v678_v26 = vunpack.c.l.bf16 %v724_v14  ;;  %v710_v27 = vunpack.c.l.bf16 %v731_v15 }
  0x24   : > { %v505_v28 = vmax.f32 %v489_v20, 0.0  ;;  %v375_v29 = vmul.f32 %v675_v22, %v851_v0  ;;  %v453_v30 = vmul.f32 %v707_v23, %v856_v1  ;;  %v679_v31 = vunpack.c.h.bf16 %v724_v14 }
  0x25   : > { %v506_v33 = vmax.f32 %v490_v24, 0.0  ;;  %v491_v34 = vadd.f32 %v475_v25, %v397_v21  ;;  %v376_v35 = vmul.f32 %v678_v26, %v851_v0  ;;  %v454_v36 = vmul.f32 %v710_v27, %v856_v1 }
  0x26   : > { %521 = vst [vmem:[%s894_s19 + $0x30] sm:$0xff] %v505_v28  ;;  %v398_v38 = vadd.f32 %v865_v10, %v375_v29  ;;  %v476_v39 = vadd.f32 %v870_v11, %v453_v30  ;;  %v377_v40 = vmul.f32 %v679_v31, %v851_v0  ;;  %v711_v41 = vunpack.c.h.bf16 %v731_v15 }
  0x27   : > { %522 = vst [vmem:[%s894_s19 + $0x38] sm:$0xff] %v506_v33  ;;  %v507_v42 = vmax.f32 %v491_v34, 0.0  ;;  %v399_v43 = vadd.f32 %v865_v10, %v376_v35  ;;  %v477_v44 = vadd.f32 %v870_v11, %v454_v36  ;;  %v682_v45 = vunpack.c.l.bf16 %v725_v32 }
  0x28   : > { %v492_v47 = vadd.f32 %v476_v39, %v398_v38  ;;  %v400_v48 = vadd.f32 %v865_v10, %v377_v40  ;;  %v455_v49 = vmul.f32 %v711_v41, %v856_v1  ;;  %v714_v50 = vunpack.c.l.bf16 %v732_v37 }
  0x29   : > { %523 = vst [vmem:[%s894_s19 + $0x40] sm:$0xff] %v507_v42  ;;  %v493_v51 = vadd.f32 %v477_v44, %v399_v43  ;;  %v378_v52 = vmul.f32 %v682_v45, %v851_v0  ;;  %v683_v53 = vunpack.c.h.bf16 %v725_v32  ;;  %v715_v54 = vunpack.c.h.bf16 %v732_v37 }
  0x2a   : > { %v508_v56 = vmax.f32 %v492_v47, 0.0  ;;  %v478_v57 = vadd.f32 %v870_v11, %v455_v49  ;;  %v456_v58 = vmul.f32 %v714_v50, %v856_v1  ;;  %v686_v59 = vunpack.c.l.bf16 %v726_v46 }
  0x2b   : > { %v509_v60 = vmax.f32 %v493_v51, 0.0  ;;  %v401_v61 = vadd.f32 %v865_v10, %v378_v52  ;;  %v379_v62 = vmul.f32 %v683_v53, %v851_v0  ;;  %v457_v63 = vmul.f32 %v715_v54, %v856_v1 }
  0x2c   : > { %524 = vst [vmem:[%s894_s19 + $0x48] sm:$0xff] %v508_v56  ;;  %v494_v2 = vadd.f32 %v478_v57, %v400_v48  ;;  %v479_v3 = vadd.f32 %v870_v11, %v456_v58  ;;  %v380_v4 = vmul.f32 %v686_v59, %v851_v0  ;;  %v718_v5 = vunpack.c.l.bf16 %v733_v55 }
  0x2d   : > { %525 = vst [vmem:[%s894_s19 + $0x50] sm:$0xff] %v509_v60  ;;  %v402_v6 = vadd.f32 %v865_v10, %v379_v62  ;;  %v480_v7 = vadd.f32 %v870_v11, %v457_v63  ;;  %v687_v8 = vunpack.c.h.bf16 %v726_v46  ;;  %v719_v9 = vunpack.c.h.bf16 %v733_v55 }
  0x2e   : > { %v510_v12 = vmax.f32 %v494_v2, 0.0  ;;  %v495_v13 = vadd.f32 %v479_v3, %v401_v61  ;;  %v403_v14 = vadd.f32 %v865_v10, %v380_v4  ;;  %v458_v15 = vmul.f32 %v718_v5, %v856_v1 }
  0x2f   : > { %v496_v16 = vadd.f32 %v480_v7, %v402_v6  ;;  %v381_v17 = vmul.f32 %v687_v8, %v851_v0  ;;  %v459_v18 = vmul.f32 %v719_v9, %v856_v1 }
  0x30   : > { %526 = vst [vmem:[%s894_s19 + $0x58] sm:$0xff] %v510_v12  ;;  %v511_v19 = vmax.f32 %v495_v13, 0.0  ;;  %v481_v20 = vadd.f32 %v870_v11, %v458_v15 }
  0x31   : > { %v512_v21 = vmax.f32 %v496_v16, 0.0  ;;  %v404_v22 = vadd.f32 %v865_v10, %v381_v17  ;;  %v482_v23 = vadd.f32 %v870_v11, %v459_v18 }
  0x32   : > { %527 = vst [vmem:[%s894_s19 + $0x60] sm:$0xff] %v511_v19  ;;  %v497_v24 = vadd.f32 %v481_v20, %v403_v14 }
  0x33   : > { %528 = vst [vmem:[%s894_s19 + $0x68] sm:$0xff] %v512_v21  ;;  %v498_v25 = vadd.f32 %v482_v23, %v404_v22 }
  0x34   : > { %v513_v26 = vmax.f32 %v497_v24, 0.0 }
  0x35   : > { %v514_v27 = vmax.f32 %v498_v25, 0.0 }
  0x36   : > { %529 = vst [vmem:[%s894_s19 + $0x70] sm:$0xff] %v513_v26 }
  0x37   : > { %530 = vst [vmem:[%s894_s19 + $0x78] sm:$0xff] %v514_v27 }
  0x38 PF: > { %s16_s23 = sadd.s32 1, %s780_s23   ;;  %s986_s21 = smov %s776_s22 }
  0x39   : > { %p13_p5 = scmp.ge.s32.totalorder %s16_s23, 4   ;;  %s987_s22 = smov %s989_s24 }
  0x3b   :  { %15 = sbr.rel (!%p13_p5) target bundleno = 2 (0x2), region = 77 }

// kernel: basic_block_forward.8
= control target key start
LH: loop header
LB: loop body
LE: loop exit
PB: predicated region body
PF: predicated region fallthrough
CT: control target
= control target key end

     0   :  { %s1174_s18 = smov 0   ;;  %s1176_s19 = smov 0   ;;  %s1316_s0 = inlined_call_operand.vmem [shape: bf16[2,128,4], index: 0, kind: input, shape index: {}]   ;;  %s1317_s1 = inlined_call_operand.vmem [shape: bf16[1,4,128], index: 1, kind: input, shape index: {}]   ;;  %s1318_s2 = inlined_call_operand.vmem [shape: f32[128,1], index: 2, kind: input, shape index: {}]   ;;  %s1319_s3 = inlined_call_operand.vmem [shape: bf16[2,128,128], index: 3, kind: output, shape index: {0}]   ;;  %s1320_s4 = inlined_call_operand.vmem [shape: f32[2,1,1,128], index: 4, kind: output, shape index: {1}]   ;;  %s1321_s5 = inlined_call_operand.vmem [shape: f32[2,1,1,128], index: 5, kind: output, shape index: {2}]  }
   0x1   :  { %s1178_s20 = smov 0  }
   0x2 LB: > { %s28_s21 = sadd.s32 1, %s1137_s19  ;;  %p949_p0 = scmp.ge.s32.totalorder %s1141_s20, 1  ;;  %s1141_s20 = sphi %s1178_s20, %s16_s20   ;;  %s1137_s19 = sphi %s1176_s19, %s1323_s19   ;;  %s1133_s18 = sphi %s1174_s18, %s1322_s18  }
   0x3   : > { %p30_p1 = scmp.ge.s32.totalorder %s28_s21, 2  ;;  %p221_p2 = scmp.lt.s32.totalorder %s1141_s20, 3 }
   0x5   : > { %s1325_s21 = smov (%p30_p1, %s28_s21), 0  ;;  %p222_p3 = pnand %p949_p0, %p221_p2 }
   0x6   : > { %v325_v0 = vld [vmem:[%s1317_s1] sm:$0x3] (!%p222_p3)  ;;  %vm391_vm0 = vcmask (!%p222_p3), 1041408   ;;  %p270_p4 = scmp.lt.s32.totalorder (!%p222_p3), %s1133_s18, 1  ;;  %v606_v3 = vld [vmem:[%s1318_s2 + $0x10] sm:$0xff] (!%p222_p3)  ;;  %v1143_v4 = vmov (!%p222_p3), 0  }
   0x7   : > { %225 = sbr.rel (%p222_p3) target bundleno = 282 (0x11a), region = 32  ;;  %1082 = vmatprep.subr.msk.bf16.mxu0 (!%p222_p3), %vm391_vm0, %v325_v0  ;;  %1083 = vmatprep.subr.msk.bf16.mxu1 (!%p222_p3), %vm391_vm0, %v325_v0  ;;  %v393_v1 = vsel (!%p222_p3), %vm391_vm0, %v325_v0, 0  ;;  %v604_v2 = vld [vmem:[%s1318_s2] sm:$0xff] (!%p222_p3)  ;;  %vm366_vm1 = vcmask (!%p222_p3), 31744   ;;  %v605_v5 = vld [vmem:[%s1318_s2 + $0x8] sm:$0xff] (!%p222_p3)  ;;  %v607_v6 = vld [vmem:[%s1318_s2 + $0x18] sm:$0xff] (!%p222_p3) }
   0x8   : > { %1063 = vmatpush3.bf16.msra.mxu0 (!%p222_p3), %v393_v1  ;;  %1081 = vmatpush3.bf16.msra.mxu1 (!%p222_p3), %v393_v1  ;;  %v608_v9 = vld [vmem:[%s1318_s2 + $0x20] sm:$0xff] (!%p222_p3)  ;;  %v609_v11 = vld [vmem:[%s1318_s2 + $0x28] sm:$0xff] (!%p222_p3)  ;;  %v610_v15 = vld [vmem:[%s1318_s2 + $0x30] sm:$0xff] (!%p222_p3) }
   0x9   : > { %1109 = vset.pattern.permute.xlu0 (!%p222_p3), %v1143_v4  ;;  %1110 = vset.pattern.permute.xlu1 (!%p222_p3), %v1143_v4  ;;  %v611_v17 = vld [vmem:[%s1318_s2 + $0x38] sm:$0xff] (!%p222_p3)  ;;  %v612_v19 = vld [vmem:[%s1318_s2 + $0x40] sm:$0xff] (!%p222_p3)  ;;  %v613_v20 = vld [vmem:[%s1318_s2 + $0x48] sm:$0xff] (!%p222_p3) }
   0xa   : > { %622 = vperm.xlu0 (!%p222_p3), %1109, %v604_v2   ;;  %632 = vperm.xlu1 (!%p222_p3), %1110, %v606_v3   ;;  %v614_v21 = vld [vmem:[%s1318_s2 + $0x50] sm:$0xff] (!%p222_p3)  ;;  %v615_v22 = vld [vmem:[%s1318_s2 + $0x58] sm:$0xff] (!%p222_p3)  ;;  %v616_v23 = vld [vmem:[%s1318_s2 + $0x60] sm:$0xff] (!%p222_p3) }
   0xb   : > { %v617_v24 = vld [vmem:[%s1318_s2 + $0x68] sm:$0xff] (!%p222_p3)  ;;  %v618_v25 = vld [vmem:[%s1318_s2 + $0x70] sm:$0xff] (!%p222_p3)  ;;  %v619_v26 = vld [vmem:[%s1318_s2 + $0x78] sm:$0xff] (!%p222_p3) }
   0xe   : > { %s1327_s18 = smov (!%p270_p4, %s1133_s18), 1  ;;  %627 = vperm.xlu0 %1109, %v605_v5   ;;  %637 = vperm.xlu1 %1110, %v607_v6  }
   0xf   : > { %s988_s28 = sshll.u32 %s1327_s18, 6  ;;  %s296_s23 = scalar_lea.vmem %s1320_s4, %s1327_s18 }
  0x10   : > { %s274_s6 = scalar_lea.vmem %s1316_s0, %s988_s28  ;;  %s1268_s17 = scalar_lea.vmem %s1319_s3, %s988_s28 }
  0x11   : > { %v1111_v7 = vld [vmem:[%s274_s6] sm:$0xff]   ;;  %v1113_v10 = vld [vmem:[%s274_s6 + $0x8] sm:$0xff]   ;;  %v1115_v13 = vld [vmem:[%s274_s6 + $0x10] sm:$0xff]   ;;  %s302_s26 = scalar_lea.vmem %s1321_s5, %s1327_s18 }
  0x12   : > { %v1112_v8 = vld [vmem:[%s274_s6 + $0x20] sm:$0xff]   ;;  %1064 = vmatprep.mubr.msk.bf16.mxu0 %vm366_vm1, %v1111_v7  ;;  %v1114_v12 = vld [vmem:[%s274_s6 + $0x28] sm:$0xff]   ;;  %v1116_v14 = vld [vmem:[%s274_s6 + $0x30] sm:$0xff]   ;;  %642 = vperm.xlu0 %1109, %v608_v9  }
  0x13   : > { %1072 = vmatprep.mubr.msk.bf16.mxu1 %vm366_vm1, %v1112_v8  ;;  %1065 = vmatmul.mubr.msk.bf16.vlgmr.msra.gmra.mrb[0].mxu0 %vm366_vm1, %v1113_v10  ;;  %v1117_v16 = vld [vmem:[%s274_s6 + $0x18] sm:$0xff]  }
  0x14   : > { %1073 = vmatmul.mubr.msk.bf16.vlgmr.msra.gmra.mrb[0].mxu1 %vm366_vm1, %v1114_v12  ;;  %1068 = vmatprep.mubr.msk.bf16.mxu0 %vm366_vm1, %v1115_v13  ;;  %v1118_v18 = vld [vmem:[%s274_s6 + $0x38] sm:$0xff]  }
  0x15   : > { %1076 = vmatprep.mubr.msk.bf16.mxu1 %vm366_vm1, %v1116_v14  ;;  %647 = vperm.xlu1 %1110, %v609_v11  }
  0x16   : > { %652 = vperm.xlu0 %1109, %v610_v15  }
  0x19   : > { %657 = vperm.xlu1 %1110, %v611_v17  }
  0x1a   : > { %662 = vperm.xlu0 %1109, %v612_v19  }
  0x1b   : > { %1069 = vmatmul.mubr.msk.bf16.gmra.mrb[4].mxu0 %vm366_vm1, %v1117_v16 }
  0x1c   : > { %1077 = vmatmul.mubr.msk.bf16.gmra.mrb[4].mxu1 %vm366_vm1, %v1118_v18 }
  0x1d   : > { %667 = vperm.xlu1 %1110, %v613_v20  }
  0x1e   : > { %672 = vperm.xlu0 %1109, %v614_v21  }
  0x21   : > { %677 = vperm.xlu1 %1110, %v615_v22  }
  0x22   : > { %682 = vperm.xlu0 %1109, %v616_v23  }
  0x25   : > { %687 = vperm.xlu1 %1110, %v617_v24  }
  0x26   : > { %692 = vperm.xlu0 %1109, %v618_v25  }
  0x29   : > { %697 = vperm.xlu1 %1110, %v619_v26  }
  0x89   : > { %v623_v27 = vpop.permute.xlu0 %622  ;;  %v633_v28 = vpop.permute.xlu1 %632 }
  0x8d   : > { %v628_v29 = vpop.permute.xlu0 %627  ;;  %v638_v30 = vpop.permute.xlu1 %637 }
  0x91   : > { %v643_v31 = vpop.permute.xlu0 %642 }
  0x94   : > { %v648_v32 = vpop.permute.xlu1 %647 }
  0x95   : > { %v653_v33 = vpop.permute.xlu0 %652 }
  0x98   : > { %v658_v49 = vpop.permute.xlu1 %657 }
  0x99   : > { %v663_v54 = vpop.permute.xlu0 %662 }
  0x9c   : > { %v668_v8 = vpop.permute.xlu1 %667 }
  0x9d   : > { %v673_v20 = vpop.permute.xlu0 %672 }
  0xa0   : > { %v678_v25 = vpop.permute.xlu1 %677 }
  0xe6   : > { %v1066_v34 = vpop.f32.mrb[0].mxu0 }
  0xe7   : > { %v1259_v35 = vpop.f32.mrb[0].mxu1  ;;  %v429_v36 = vpop.f32.mrb[1].mxu0  ;;  %v702_v45 = vmul.f32 %v1066_v34, %v633_v28 }
  0xe8   : > { %v1261_v37 = vpop.f32.mrb[1].mxu1  ;;  %v1067_v38 = vpop.f32.mrb[2].mxu0  ;;  %v700_v39 = vmul.f32 %v623_v27, %v429_v36 }
  0xe9   : > { %v1014_v40 = vpack.c.bf16 %v1067_v38, %v1066_v34  ;;  %v1270_v41 = vpop.f32.mrb[2].mxu1  ;;  %v432_v42 = vpop.f32.mrb[3].mxu0  ;;  %v703_v51 = vmul.f32 %v1067_v38, %v638_v30  ;;  %v740_v56 = vmul.f32 %v1066_v34, %v702_v45  ;;  %v708_v21 = vmul.f32 %v663_v54, %v1261_v37 }
  0xea   : > { %v1034_v43 = vpack.c.bf16 %v1270_v41, %v1259_v35  ;;  %v1274_v44 = vpop.f32.mrb[3].mxu1  ;;  %v1009_v46 = vpack.c.bf16 %v432_v42, %v429_v36  ;;  %v701_v47 = vmul.f32 %v628_v29, %v432_v42  ;;  %v738_v50 = vmul.f32 %v700_v39, %v429_v36  ;;  %v683_v34 = vpop.permute.xlu0 %682 }
  0xeb   : > { %1046 = vst [vmem:[%s1268_s17 + $0x8] sm:$0xff] %v1014_v40   ;;  %v1029_v48 = vpack.c.bf16 %v1274_v44, %v1261_v37  ;;  %v741_v0 = vmul.f32 %v1067_v38, %v703_v51  ;;  %v709_v26 = vmul.f32 %v668_v8, %v1274_v44  ;;  %v710_v30 = vmul.f32 %v1259_v35, %v673_v20 }
  0xec   : > { %1050 = vst [vmem:[%s1268_s17 + $0x28] sm:$0xff] %v1034_v43   ;;  %1010 = vst [vmem:[%s1268_s17] sm:$0xff] %v1009_v46   ;;  %v716_v52 = vadd.f32 %v701_v47, %v700_v39  ;;  %v739_v53 = vmul.f32 %v701_v47, %v432_v42  ;;  %v711_v36 = vmul.f32 %v1270_v41, %v678_v25  ;;  %v688_v42 = vpop.permute.xlu1 %687 }
  0xed   : > { %1049 = vst [vmem:[%s1268_s17 + $0x20] sm:$0xff] %v1029_v48   ;;  %v747_v38 = vmul.f32 %v709_v26, %v1274_v44  ;;  %v748_v43 = vmul.f32 %v1259_v35, %v710_v30 }
  0xee   : > { %v1070_v55 = vpop.f32.mrb[4].mxu0  ;;  %v717_v57 = vadd.f32 %v716_v52, %v702_v45  ;;  %v754_v58 = vadd.f32 %v739_v53, %v738_v50  ;;  %v749_v48 = vmul.f32 %v1270_v41, %v711_v36 }
  0xef   : > { %v1282_v59 = vpop.f32.mrb[4].mxu1  ;;  %v445_v60 = vpop.f32.mrb[5].mxu0  ;;  %v706_v12 = vmul.f32 %v1070_v55, %v653_v33 }
  0xf0   : > { %v704_v61 = vmul.f32 %v643_v31, %v445_v60  ;;  %v477_v62 = vpop.f32.mrb[5].mxu1  ;;  %v1071_v63 = vpop.f32.mrb[6].mxu0  ;;  %v755_v1 = vadd.f32 %v754_v58, %v740_v56  ;;  %v718_v2 = vadd.f32 %v717_v57, %v703_v51  ;;  %v746_v31 = vmul.f32 %v708_v21, %v1261_v37 }
  0xf1   : > { %v1079_v3 = vpop.f32.mrb[6].mxu1  ;;  %v448_v4 = vpop.f32.mrb[7].mxu0  ;;  %v1024_v6 = vpack.c.bf16 %v1071_v63, %v1070_v55  ;;  %v707_v17 = vmul.f32 %v1071_v63, %v658_v49  ;;  %v744_v22 = vmul.f32 %v1070_v55, %v706_v12  ;;  %v712_v45 = vmul.f32 %v683_v34, %v477_v62 }
  0xf2   : > { %v742_v5 = vmul.f32 %v704_v61, %v445_v60  ;;  %v480_v7 = vpop.f32.mrb[7].mxu1  ;;  %v719_v9 = vadd.f32 %v718_v2, %v704_v61  ;;  %v756_v10 = vadd.f32 %v755_v1, %v741_v0  ;;  %v1044_v11 = vpack.c.bf16 %v1079_v3, %v1282_v59  ;;  %v693_v51 = vpop.permute.xlu0 %692 }
  0xf3   : > { %1048 = vst [vmem:[%s1268_s17 + $0x18] sm:$0xff] %v1024_v6   ;;  %v1019_v13 = vpack.c.bf16 %v448_v4, %v445_v60  ;;  %v705_v14 = vmul.f32 %v648_v32, %v448_v4  ;;  %v1039_v16 = vpack.c.bf16 %v480_v7, %v477_v62  ;;  %v745_v27 = vmul.f32 %v1071_v63, %v707_v17  ;;  %v698_v44 = vpop.permute.xlu1 %697 }
  0xf4   : > { %v757_v15 = vadd.f32 %v756_v10, %v742_v5  ;;  %1052 = vst [vmem:[%s1268_s17 + $0x38] sm:$0xff] %v1044_v11   ;;  %v713_v49 = vmul.f32 %v688_v42, %v480_v7  ;;  %v714_v52 = vmul.f32 %v1282_v59, %v693_v51  ;;  %v750_v53 = vmul.f32 %v712_v45, %v477_v62 }
  0xf5   : > { %1047 = vst [vmem:[%s1268_s17 + $0x10] sm:$0xff] %v1019_v13   ;;  %v720_v18 = vadd.f32 %v719_v9, %v705_v14  ;;  %v743_v19 = vmul.f32 %v705_v14, %v448_v4  ;;  %1051 = vst [vmem:[%s1268_s17 + $0x30] sm:$0xff] %v1039_v16   ;;  %v715_v56 = vmul.f32 %v1079_v3, %v698_v44 }
  0xf6   : > { %v751_v58 = vmul.f32 %v713_v49, %v480_v7  ;;  %v752_v35 = vmul.f32 %v1282_v59, %v714_v52 }
  0xf7   : > { %v721_v23 = vadd.f32 %v720_v18, %v706_v12  ;;  %v758_v24 = vadd.f32 %v757_v15, %v743_v19  ;;  %v753_v41 = vmul.f32 %v1079_v3, %v715_v56 }
  0xf9   : > { %v722_v28 = vadd.f32 %v721_v23, %v707_v17  ;;  %v759_v29 = vadd.f32 %v758_v24, %v744_v22 }
  0xfb   : > { %v723_v32 = vadd.f32 %v722_v28, %v708_v21  ;;  %v760_v33 = vadd.f32 %v759_v29, %v745_v27 }
  0xfd   : > { %v761_v39 = vadd.f32 %v760_v33, %v746_v31  ;;  %v724_v40 = vadd.f32 %v723_v32, %v709_v26 }
  0xff   : > { %v725_v46 = vadd.f32 %v724_v40, %v710_v30  ;;  %v762_v47 = vadd.f32 %v761_v39, %v747_v38 }
 0x101   : > { %v726_v50 = vadd.f32 %v725_v46, %v711_v36  ;;  %v763_v37 = vadd.f32 %v762_v47, %v748_v43 }
 0x103   : > { %v727_v54 = vadd.f32 %v726_v50, %v712_v45  ;;  %v764_v55 = vadd.f32 %v763_v37, %v749_v48 }
 0x105   : > { %v728_v57 = vadd.f32 %v727_v54, %v713_v49  ;;  %v765_v60 = vadd.f32 %v764_v55, %v750_v53 }
 0x107   : > { %v729_v61 = vadd.f32 %v728_v57, %v714_v52  ;;  %v766_v63 = vadd.f32 %v765_v60, %v751_v58 }
 0x109   : > { %v730_v0 = vadd.f32 %v729_v61, %v715_v56  ;;  %v767_v1 = vadd.f32 %v766_v63, %v752_v35 }
 0x10b   : > { %v731_v2 = vrot.slane %v730_v0, 4  ;;  %v768_v4 = vadd.f32 %v767_v1, %v753_v41 }
 0x10d   : > { %v732_v5 = vadd.f32 %v731_v2, %v730_v0  ;;  %v769_v62 = vrot.slane %v768_v4, 4 }
 0x10f   : > { %v733_v6 = vrot.slane %v732_v5, 2  ;;  %v770_v8 = vadd.f32 %v769_v62, %v768_v4 }
 0x111   : > { %v734_v9 = vadd.f32 %v733_v6, %v732_v5  ;;  %v771_v10 = vrot.slane %v770_v8, 2 }
 0x113   : > { %v735_v11 = vrot.slane %v734_v9, 1  ;;  %v772_v7 = vadd.f32 %v771_v10, %v770_v8 }
 0x115   : > { %v736_v59 = vadd.f32 %v735_v11, %v734_v9  ;;  %v773_v12 = vrot.slane %v772_v7, 1 }
 0x117   : > { %737 = vst [vmem:[%s296_s23] sm:$0x1] %v736_v59  ;;  %v774_v3 = vadd.f32 %v773_v12, %v772_v7 }
 0x119   : > { %775 = vst [vmem:[%s302_s26] sm:$0x1] %v774_v3 }
 0x11a PF: > { %s16_s20 = sadd.s32 1, %s1141_s20   ;;  %s1322_s18 = smov %s1137_s19 }
 0x11b   : > { %p13_p5 = scmp.ge.s32.totalorder %s16_s20, 4   ;;  %s1323_s19 = smov %s1325_s21 }
 0x11d   :  { %15 = sbr.rel (!%p13_p5) target bundleno = 2 (0x2), region = 90 }

</bundles_post_ra>
